<compile_context>
chip_gen: v6e
topology: v6e:2x2x1
jax: 0.10.0
libtpu: 0.0.40
codegen_flags: <defaults>
</compile_context>

<pallas_src>
import jax
import jax.numpy as jnp
from jax.experimental import pallas as pl
from jax.experimental.pallas import tpu as pltpu

KSIZE = 7
PAD = 3
NPLANE = 3          # three input planes -> three output planes


def optical_conv_kernel(x_ref, band_ref, bias_ref, o_ref, xpad_ref):
    """One batch-group grid step.

    x_ref    : VMEM (H, L) f32      -- lane-packed input rows, L = 3*NB*W
    band_ref : VMEM (7, L, L) f32   -- per-ki block-diagonal banded weights
    bias_ref : VMEM (1, L) f32      -- per-lane effective bias
    o_ref    : VMEM (H, L) f32
    xpad_ref : VMEM (H + 2*PAD, L) f32 scratch (row-padded copy of x)
    """
    H, L = o_ref.shape

    # H-direction zero padding lives in this scratch.  Re-zeroed every step so
    # the kernel stays correct under megacore grid sharding.
    xpad_ref[0:PAD, :] = jnp.zeros((PAD, L), jnp.float32)
    xpad_ref[PAD:PAD + H, :] = x_ref[...]
    xpad_ref[PAD + H:PAD + H + PAD, :] = jnp.zeros((PAD, L), jnp.float32)

    # Bias folded into the accumulator init (one broadcast, no trailing pass).
    acc = jnp.zeros((H, L), jnp.float32) + bias_ref[...]

    # 7 banded MXU matmuls replace the 49-tap VPU MAC loop.  f32 with HIGHEST
    # precision so numerics match the f32 conv reference.
    for ki in range(KSIZE):
        acc = acc + jnp.dot(
            xpad_ref[ki:ki + H, :], band_ref[ki],
            precision=jax.lax.Precision.HIGHEST,
            preferred_element_type=jnp.float32)

    o_ref[...] = acc


def _vmem_limit_bytes():
    """Generation-aware VMEM limit: ~48 MiB on v7x (64 MiB physical),
    ~96 MiB on v5e/v6e (128 MiB physical)."""
    cap = 64 << 20
    try:
        cap = int(getattr(pltpu.get_tpu_info(), "vmem_capacity_bytes", cap))
    except Exception:
        pass
    return int(min(cap * 3 // 4, 112 << 20))


def _pick_batch_group(N, H, W, budget_bytes):
    """Images fused per grid step: push the lane dim 3*NB*W toward >= 128 for
    small W while keeping band weights + double-buffered blocks + scratch
    inside the VMEM budget."""
    nb_max = max(1, min(N, max(1, 128 // W) if W < 128 else 1))
    for nb in range(nb_max, 0, -1):
        L = NPLANE * nb * W
        band_bytes = 2 * KSIZE * L * L * 4     # x2: pipeline double-buffer
        block_bytes = 2 * 2 * H * L * 4        # in + out blocks, double-buffered
        scratch_bytes = (H + 2 * PAD) * L * 4
        if band_bytes + block_bytes + scratch_bytes <= budget_bytes:
            return nb
    return 1


def optical_conv(x, filter_weights, filter_biases):
    """x: (N, C>=3, H, W); filter_weights: 3 arrays (OC, 1, 7, 7); filter_biases: 3 arrays (OC,).

    Returns (N, 3, H, W) f32, matching OpticalConv.forward.
    """
    N, C, H, W = x.shape
    assert C >= NPLANE, "OpticalConv uses input channels 0..2"
    f32 = jnp.float32

    # Effective per-plane filter / bias (out-channel sums folded once, exact by linearity).
    w_eff = jnp.stack([w.astype(f32).sum(axis=(0, 1)) for w in filter_weights])   # (3, 7, 7)
    b_eff = jnp.stack([b.astype(f32).sum() for b in filter_biases])               # (3,)

    vmem_limit = _vmem_limit_bytes()
    NB = _pick_batch_group(N, H, W, budget_bytes=vmem_limit // 2)
    L = NPLANE * NB * W
    G = -(-N // NB)           # ceil(N / NB) batch groups
    Npad = G * NB

    # ---- banded weights: fold column taps + W zero-padding into (W, W) bands ----
    r = jnp.arange(W)[:, None]            # input column (contraction index)
    j = jnp.arange(W)[None, :]            # output column
    kj = r - j + PAD                      # tap index; valid taps carry w[ki, kj]
    valid = (kj >= 0) & (kj < KSIZE)
    band_small = jnp.where(valid[None, None],
                           w_eff[:, :, jnp.clip(kj, 0, KSIZE - 1)], 0.0)          # (3, 7, W, W)

    # Block-diagonal across (plane, image-in-group): lane block m = c*NB + n.
    M = NPLANE * NB
    bb = jnp.repeat(band_small, NB, axis=0)                                       # (M, 7, W, W)
    band = jnp.einsum("mn,mkab->kmanb", jnp.eye(M, dtype=f32), bb)                # (7, M, W, M, W)
    band = band.reshape(KSIZE, L, L)
    bias_row = jnp.repeat(b_eff, NB * W).reshape(1, L)

    # ---- lane-pack the input: (N, 3, H, W) -> (G, H, 3*NB*W) ----
    xin = x[:, :NPLANE].astype(f32)
    if Npad != N:
        xin = jnp.concatenate([xin, jnp.zeros((Npad - N, NPLANE, H, W), f32)], axis=0)
    xp = jnp.transpose(xin.reshape(G, NB, NPLANE, H, W), (0, 3, 2, 1, 4)).reshape(G, H, L)

    # TODO(synk): for very large W the dense (W, W) bands / whole-image blocks
    # outgrow VMEM; that case needs W/H spatial tiling of the banded path.
    out = pl.pallas_call(
        optical_conv_kernel,
        out_shape=jax.ShapeDtypeStruct((G, H, L), f32),
        grid=(G,),
        in_specs=[
            pl.BlockSpec((None, H, L), lambda g: (g, 0, 0)),        # packed input rows
            pl.BlockSpec((KSIZE, L, L), lambda g: (0, 0, 0)),       # resident banded weights
            pl.BlockSpec((1, L), lambda g: (0, 0)),                 # resident per-lane bias
        ],
        out_specs=pl.BlockSpec((None, H, L), lambda g: (g, 0, 0)),
        scratch_shapes=[pltpu.VMEM((H + 2 * PAD, L), f32)],
        compiler_params=pltpu.CompilerParams(
            dimension_semantics=("parallel",),
            vmem_limit_bytes=vmem_limit),
    )(xp, band, bias_row)

    # ---- unpack back to (N, 3, H, W) ----
    out = jnp.transpose(out.reshape(G, H, NPLANE, NB, W), (0, 3, 2, 1, 4))
    return out.reshape(Npad, NPLANE, H, W)[:N]


def reference(x, filter_weights, filter_biases):
    """Pure-JAX replica of OpticalConv.forward (3 convs, per-bank channel sum, concat)."""
    outs = []
    for c in range(NPLANE):
        xc = x[:, c:c + 1].astype(jnp.float32)
        dn = jax.lax.conv_dimension_numbers(xc.shape, filter_weights[c].shape,
                                            ("NCHW", "OIHW", "NCHW"))
        o = jax.lax.conv_general_dilated(
            xc, filter_weights[c].astype(jnp.float32), window_strides=(1, 1),
            padding=((PAD, PAD), (PAD, PAD)), dimension_numbers=dn,
            precision=jax.lax.Precision.HIGHEST)
        o = o + filter_biases[c].astype(jnp.float32)[None, :, None, None]
        outs.append(jnp.sum(o, axis=1, keepdims=True))
    return jnp.concatenate(outs, axis=1)


if __name__ == "__main__":
    key = jax.random.PRNGKey(0)
    keys = jax.random.split(key, 7)

    N, C, H, W = 2, 3, 16, 16
    OC = 3  # mask=6 -> out_channel = mask // 2

    x = jax.random.normal(keys[0], (N, C, H, W), dtype=jnp.float32)
    filter_weights = [0.1 * jax.random.normal(keys[1 + i], (OC, 1, KSIZE, KSIZE),
                                              dtype=jnp.float32) for i in range(3)]
    filter_biases = [0.1 * jax.random.normal(keys[4 + i], (OC,), dtype=jnp.float32)
                     for i in range(3)]

    out = optical_conv(x, filter_weights, filter_biases)
    out = jax.block_until_ready(out)

    ref = reference(x, filter_weights, filter_biases)
    assert out.shape == (N, NPLANE, H, W)
    max_err = jnp.max(jnp.abs(out - ref))
    assert jnp.allclose(out, ref, atol=1e-3, rtol=1e-3), f"max err {max_err}"

    print("KERNEL_OK")
</pallas_src>

<mosaic_0001>
module attributes {stable_mosaic.version = 11 : i64} {
  func.func @optical_conv_kernel(%arg0: i32, %arg1: memref<1x16x96xf32, #tpu.memory_space<vmem>>, %arg2: memref<7x96x96xf32, #tpu.memory_space<vmem>>, %arg3: memref<1x96xf32, #tpu.memory_space<vmem>>, %arg4: memref<1x16x96xf32, #tpu.memory_space<vmem>>, %arg5: memref<22x96xf32, #tpu.memory_space<vmem>>) attributes {dimension_semantics = [#tpu.dimension_semantics<parallel>], iteration_bounds = array<i64: 1>, scalar_prefetch = 0 : i64, scratch_operands = 1 : i64, tpu.core_type = #tpu.core_type<tc>, window_params = [{transform_indices = @transform_0, window_bounds = array<i64: 1, 16, 96>}, {pipeline_mode = #tpu.pipeline_mode<synchronous>, transform_indices = @transform_1, window_bounds = array<i64: 7, 96, 96>}, {pipeline_mode = #tpu.pipeline_mode<synchronous>, transform_indices = @transform_2, window_bounds = array<i64: 1, 96>}, {transform_indices = @transform_3, window_bounds = array<i64: 1, 16, 96>}]} {
    %cst = arith.constant 0.000000e+00 : f32
    %0 = vector.broadcast %cst : f32 to vector<3x96xf32>
    %c0 = arith.constant 0 : index
    %c0_0 = arith.constant 0 : index
    %1 = vector.load %arg5[%c0, %c0_0] : memref<22x96xf32, #tpu.memory_space<vmem>>, vector<3x96xf32>
    tpu.vector_store %arg5[%c0, %c0_0], %0 {strides = array<i32>} : memref<22x96xf32, #tpu.memory_space<vmem>>, vector<3x96xf32>,
    %c0_1 = arith.constant 0 : index
    %c0_2 = arith.constant 0 : index
    %c0_3 = arith.constant 0 : index
    %2 = vector.load %arg1[%c0_1, %c0_2, %c0_3] : memref<1x16x96xf32, #tpu.memory_space<vmem>>, vector<1x16x96xf32>
    %3 = vector.shape_cast %2 : vector<1x16x96xf32> to vector<16x96xf32>
    %c3 = arith.constant 3 : index
    %c0_4 = arith.constant 0 : index
    %4 = vector.load %arg5[%c3, %c0_4] : memref<22x96xf32, #tpu.memory_space<vmem>>, vector<16x96xf32>
    tpu.vector_store %arg5[%c3, %c0_4], %3 {strides = array<i32>} : memref<22x96xf32, #tpu.memory_space<vmem>>, vector<16x96xf32>,
    %cst_5 = arith.constant 0.000000e+00 : f32
    %5 = vector.broadcast %cst_5 : f32 to vector<3x96xf32>
    %c19 = arith.constant 19 : index
    %c0_6 = arith.constant 0 : index
    %6 = vector.load %arg5[%c19, %c0_6] : memref<22x96xf32, #tpu.memory_space<vmem>>, vector<3x96xf32>
    tpu.vector_store %arg5[%c19, %c0_6], %5 {strides = array<i32>} : memref<22x96xf32, #tpu.memory_space<vmem>>, vector<3x96xf32>,
    %cst_7 = arith.constant 0.000000e+00 : f32
    %7 = vector.broadcast %cst_7 : f32 to vector<16x96xf32>
    %c0_8 = arith.constant 0 : index
    %c0_9 = arith.constant 0 : index
    %8 = vector.load %arg3[%c0_8, %c0_9] : memref<1x96xf32, #tpu.memory_space<vmem>>, vector<1x96xf32>
    %9 = vector.broadcast %8 : vector<1x96xf32> to vector<16x96xf32>
    %10 = arith.addf %7, %9 : vector<16x96xf32>
    %c0_10 = arith.constant 0 : index
    %c0_11 = arith.constant 0 : index
    %11 = vector.load %arg5[%c0_10, %c0_11] : memref<22x96xf32, #tpu.memory_space<vmem>>, vector<16x96xf32>
    %c0_12 = arith.constant 0 : index
    %c0_13 = arith.constant 0 : index
    %c0_14 = arith.constant 0 : index
    %12 = vector.load %arg2[%c0_12, %c0_13, %c0_14] : memref<7x96x96xf32, #tpu.memory_space<vmem>>, vector<1x96x96xf32>
    %13 = vector.shape_cast %12 : vector<1x96x96xf32> to vector<96x96xf32>
    %cst_15 = arith.constant dense<0.000000e+00> : vector<16x96xf32>
    %14 = tpu.matmul %11, %13, %cst_15 {dimension_numbers = #tpu.dot_dimension_numbers<[1], [0], [0], [1], [0, 0, 1, 1], [], []>, precision = #tpu.contract_precision<fp32>} : vector<16x96xf32>, vector<96x96xf32>, vector<16x96xf32> -> vector<16x96xf32>
    %15 = arith.addf %10, %14 : vector<16x96xf32>
    %c1 = arith.constant 1 : index
    %c0_16 = arith.constant 0 : index
    %16 = vector.load %arg5[%c1, %c0_16] : memref<22x96xf32, #tpu.memory_space<vmem>>, vector<16x96xf32>
    %c1_17 = arith.constant 1 : index
    %c0_18 = arith.constant 0 : index
    %c0_19 = arith.constant 0 : index
    %17 = vector.load %arg2[%c1_17, %c0_18, %c0_19] : memref<7x96x96xf32, #tpu.memory_space<vmem>>, vector<1x96x96xf32>
    %18 = vector.shape_cast %17 : vector<1x96x96xf32> to vector<96x96xf32>
    %cst_20 = arith.constant dense<0.000000e+00> : vector<16x96xf32>
    %19 = tpu.matmul %16, %18, %cst_20 {dimension_numbers = #tpu.dot_dimension_numbers<[1], [0], [0], [1], [0, 0, 1, 1], [], []>, precision = #tpu.contract_precision<fp32>} : vector<16x96xf32>, vector<96x96xf32>, vector<16x96xf32> -> vector<16x96xf32>
    %20 = arith.addf %15, %19 : vector<16x96xf32>
    %c2 = arith.constant 2 : index
    %c0_21 = arith.constant 0 : index
    %21 = vector.load %arg5[%c2, %c0_21] : memref<22x96xf32, #tpu.memory_space<vmem>>, vector<16x96xf32>
    %c2_22 = arith.constant 2 : index
    %c0_23 = arith.constant 0 : index
    %c0_24 = arith.constant 0 : index
    %22 = vector.load %arg2[%c2_22, %c0_23, %c0_24] : memref<7x96x96xf32, #tpu.memory_space<vmem>>, vector<1x96x96xf32>
    %23 = vector.shape_cast %22 : vector<1x96x96xf32> to vector<96x96xf32>
    %cst_25 = arith.constant dense<0.000000e+00> : vector<16x96xf32>
    %24 = tpu.matmul %21, %23, %cst_25 {dimension_numbers = #tpu.dot_dimension_numbers<[1], [0], [0], [1], [0, 0, 1, 1], [], []>, precision = #tpu.contract_precision<fp32>} : vector<16x96xf32>, vector<96x96xf32>, vector<16x96xf32> -> vector<16x96xf32>
    %25 = arith.addf %20, %24 : vector<16x96xf32>
    %c3_26 = arith.constant 3 : index
    %c0_27 = arith.constant 0 : index
    %26 = vector.load %arg5[%c3_26, %c0_27] : memref<22x96xf32, #tpu.memory_space<vmem>>, vector<16x96xf32>
    %c3_28 = arith.constant 3 : index
    %c0_29 = arith.constant 0 : index
    %c0_30 = arith.constant 0 : index
    %27 = vector.load %arg2[%c3_28, %c0_29, %c0_30] : memref<7x96x96xf32, #tpu.memory_space<vmem>>, vector<1x96x96xf32>
    %28 = vector.shape_cast %27 : vector<1x96x96xf32> to vector<96x96xf32>
    %cst_31 = arith.constant dense<0.000000e+00> : vector<16x96xf32>
    %29 = tpu.matmul %26, %28, %cst_31 {dimension_numbers = #tpu.dot_dimension_numbers<[1], [0], [0], [1], [0, 0, 1, 1], [], []>, precision = #tpu.contract_precision<fp32>} : vector<16x96xf32>, vector<96x96xf32>, vector<16x96xf32> -> vector<16x96xf32>
    %30 = arith.addf %25, %29 : vector<16x96xf32>
    %c4 = arith.constant 4 : index
    %c0_32 = arith.constant 0 : index
    %31 = vector.load %arg5[%c4, %c0_32] : memref<22x96xf32, #tpu.memory_space<vmem>>, vector<16x96xf32>
    %c4_33 = arith.constant 4 : index
    %c0_34 = arith.constant 0 : index
    %c0_35 = arith.constant 0 : index
    %32 = vector.load %arg2[%c4_33, %c0_34, %c0_35] : memref<7x96x96xf32, #tpu.memory_space<vmem>>, vector<1x96x96xf32>
    %33 = vector.shape_cast %32 : vector<1x96x96xf32> to vector<96x96xf32>
    %cst_36 = arith.constant dense<0.000000e+00> : vector<16x96xf32>
    %34 = tpu.matmul %31, %33, %cst_36 {dimension_numbers = #tpu.dot_dimension_numbers<[1], [0], [0], [1], [0, 0, 1, 1], [], []>, precision = #tpu.contract_precision<fp32>} : vector<16x96xf32>, vector<96x96xf32>, vector<16x96xf32> -> vector<16x96xf32>
    %35 = arith.addf %30, %34 : vector<16x96xf32>
    %c5 = arith.constant 5 : index
    %c0_37 = arith.constant 0 : index
    %36 = vector.load %arg5[%c5, %c0_37] : memref<22x96xf32, #tpu.memory_space<vmem>>, vector<16x96xf32>
    %c5_38 = arith.constant 5 : index
    %c0_39 = arith.constant 0 : index
    %c0_40 = arith.constant 0 : index
    %37 = vector.load %arg2[%c5_38, %c0_39, %c0_40] : memref<7x96x96xf32, #tpu.memory_space<vmem>>, vector<1x96x96xf32>
    %38 = vector.shape_cast %37 : vector<1x96x96xf32> to vector<96x96xf32>
    %cst_41 = arith.constant dense<0.000000e+00> : vector<16x96xf32>
    %39 = tpu.matmul %36, %38, %cst_41 {dimension_numbers = #tpu.dot_dimension_numbers<[1], [0], [0], [1], [0, 0, 1, 1], [], []>, precision = #tpu.contract_precision<fp32>} : vector<16x96xf32>, vector<96x96xf32>, vector<16x96xf32> -> vector<16x96xf32>
    %40 = arith.addf %35, %39 : vector<16x96xf32>
    %c6 = arith.constant 6 : index
    %c0_42 = arith.constant 0 : index
    %41 = vector.load %arg5[%c6, %c0_42] : memref<22x96xf32, #tpu.memory_space<vmem>>, vector<16x96xf32>
    %c6_43 = arith.constant 6 : index
    %c0_44 = arith.constant 0 : index
    %c0_45 = arith.constant 0 : index
    %42 = vector.load %arg2[%c6_43, %c0_44, %c0_45] : memref<7x96x96xf32, #tpu.memory_space<vmem>>, vector<1x96x96xf32>
    %43 = vector.shape_cast %42 : vector<1x96x96xf32> to vector<96x96xf32>
    %cst_46 = arith.constant dense<0.000000e+00> : vector<16x96xf32>
    %44 = tpu.matmul %41, %43, %cst_46 {dimension_numbers = #tpu.dot_dimension_numbers<[1], [0], [0], [1], [0, 0, 1, 1], [], []>, precision = #tpu.contract_precision<fp32>} : vector<16x96xf32>, vector<96x96xf32>, vector<16x96xf32> -> vector<16x96xf32>
    %45 = arith.addf %40, %44 : vector<16x96xf32>
    %c0_47 = arith.constant 0 : index
    %c0_48 = arith.constant 0 : index
    %c0_49 = arith.constant 0 : index
    %46 = vector.load %arg4[%c0_47, %c0_48, %c0_49] : memref<1x16x96xf32, #tpu.memory_space<vmem>>, vector<1x16x96xf32>
    %47 = vector.shape_cast %46 : vector<1x16x96xf32> to vector<16x96xf32>
    %48 = vector.shape_cast %45 : vector<16x96xf32> to vector<1x16x96xf32>
    tpu.vector_store %arg4[%c0_47, %c0_48, %c0_49], %48 {strides = array<i32>} : memref<1x16x96xf32, #tpu.memory_space<vmem>>, vector<1x16x96xf32>,
    return
  }
  func.func @transform_0(%arg0: i32) -> (i32, i32, i32) {
    %c0_i32 = arith.constant 0 : i32
    %c0_i32_0 = arith.constant 0 : i32
    %c0_i32_1 = arith.constant 0 : i32
    return %arg0, %c0_i32, %c0_i32_0 : i32, i32, i32
  }
  func.func @transform_1(%arg0: i32) -> (i32, i32, i32) {
    %c0_i32 = arith.constant 0 : i32
    %c0_i32_0 = arith.constant 0 : i32
    %c0_i32_1 = arith.constant 0 : i32
    %c0_i32_2 = arith.constant 0 : i32
    return %c0_i32, %c0_i32_0, %c0_i32_1 : i32, i32, i32
  }
  func.func @transform_2(%arg0: i32) -> (i32, i32) {
    %c0_i32 = arith.constant 0 : i32
    %c0_i32_0 = arith.constant 0 : i32
    %c0_i32_1 = arith.constant 0 : i32
    return %c0_i32, %c0_i32_0 : i32, i32
  }
  func.func @transform_3(%arg0: i32) -> (i32, i32, i32) {
    %c0_i32 = arith.constant 0 : i32
    %c0_i32_0 = arith.constant 0 : i32
    %c0_i32_1 = arith.constant 0 : i32
    return %arg0, %c0_i32, %c0_i32_0 : i32, i32, i32
  }
}

</mosaic_0001>

<bundles_post_ra>
// kernel: tpu_custom_call.1
= control target key start
LH: loop header
LB: loop body
LE: loop exit
PB: predicated region body
PF: predicated region fallthrough
CT: control target
= control target key end

     0   :  { %8 = vsyncpa [#allocation4], 0  ;;  %s8569_s0 = inlined_call_operand.hbm [shape: f32[1,16,96], index: 0, kind: input, shape index: {}]   ;;  %s8570_s1 = inlined_call_operand.hbm [shape: f32[7,96,96], index: 1, kind: input, shape index: {}]   ;;  %s8571_s2 = inlined_call_operand.vmem [shape: f32[1,96], index: 2, kind: input, shape index: {}]   ;;  %s8572_s3 = inlined_call_operand.hbm [shape: f32[1,16,96], index: 3, kind: output, shape index: {}]  }
   0x1   :  { %9 = vsyncpa [#allocation7], 0 }
   0x2   :  { %10 = vsyncpa [#allocation5], 0  ;;  %s6458_s12 = smov [#allocation3]  }
   0x3   :  { %s16_s13 = sshll.u32 %s6458_s12, 4  ;;  %s17_s13 = int_to_ptr.vmem [resolvable:$true] %s16_s13 }
   0x4   :  { %s6400_s14 = scalar_lea.vmem %s17_s13, 256  ;;  %p6405_p1 = scmp.lt.s32.totalorder %s17_s13, %s17_s13 }
   0x5   :  { %p6401_p0 = scmp.ne.s32.totalorder %s17_s13, %s6400_s14  ;;  %p6406_p2 = scmp.lt.s32.totalorder %s6400_s14, %s6400_s14 }
   0x7   :  { %p6407_p3 = por %p6406_p2, %p6405_p1 }
   0x9   :  { %p6408_p4 = pnand %p6407_p3, %p6401_p0 }
   0xb   :  { %6411 = shalt.err (!%p6408_p4)
}
   0xc   :  { %s6459_s15 = smov 128   ;;  %s6460_s16 = smov 8  }
   0xd   :  { %22 = dma.hbm_to_vmem [thread:$0]  %s8569_s0, 256, %s17_s13, [#allocation4], %s6459_s15, %s6459_s15, %s6460_s16  }
   0xe   :  { %s6461_s19 = smov [#allocation6]  }
   0xf   :  { %s28_s20 = sshll.u32 %s6461_s19, 4  ;;  %s29_s20 = int_to_ptr.vmem [resolvable:$true] %s28_s20 }
  0x10   :  { %s6420_s21 = scalar_lea.vmem %s29_s20, 10752  ;;  %p6425_p6 = scmp.lt.s32.totalorder %s29_s20, %s29_s20 }
  0x11   :  { %p6421_p5 = scmp.ne.s32.totalorder %s29_s20, %s6420_s21  ;;  %p6426_p7 = scmp.lt.s32.totalorder %s6420_s21, %s6420_s21 }
  0x13   :  { %p6427_p8 = por %p6426_p7, %p6425_p6 }
  0x15   :  { %p6428_p9 = pnand %p6427_p8, %p6421_p5 }
  0x17   :  { %6431 = shalt.err (!%p6428_p9)
}
  0x18   :  { %34 = dma.hbm_to_vmem [thread:$0]  %s8570_s1, 10752, %s29_s20, [#allocation7], %s6459_s15, %s6459_s15, %s6460_s16  }
  0x19   :  { %6452 = dma.done.wait [#allocation4], 256  }
  0x1a   :  { %6453 = vsyncadd [#allocation4], 4294967040 }
  0x1b   :  { %6454 = dma.done.wait [#allocation7], 10752  }
  0x1c   :  { %6455 = vsyncadd [#allocation7], 4294956544  ;;  %vm43_vm0 = vcmask 780288   ;;  %v6462_v0 = vmov 0.0   ;;  %v72_v1 = vld [vmem:[#allocation6 + $0x58] sm:$0xff]  ;;  %v71_v2 = vld [vmem:[#allocation6 + $0x50] sm:$0xff] }
  0x1d   :  { %44 = vst.msk [vmem:[#allocation2] sm:$0x7] %vm43_vm0, %v6462_v0  ;;  %50 = vst.msk [vmem:[#allocation2 + $0x13] sm:$0x7] %vm43_vm0, %v6462_v0  ;;  %v70_v3 = vld [vmem:[#allocation6 + $0x48] sm:$0xff]  ;;  %v6496_v4 = vand.u32 4294901760, %v72_v1 }
  0x1e   :  { %v6498_v5 = vand.u32 4294901760, %v71_v2  ;;  %v6500_v6 = vand.u32 4294901760, %v70_v3  ;;  %v69_v7 = vld [vmem:[#allocation6 + $0x40] sm:$0xff]  ;;  %v68_v8 = vld [vmem:[#allocation6 + $0x38] sm:$0xff]  ;;  %v67_v9 = vld [vmem:[#allocation6 + $0x30] sm:$0xff]  ;;  %vm47_vm1 = vcmask 785408  }
  0x1f   :  { %v6502_v10 = vand.u32 4294901760, %v69_v7  ;;  %v6504_v11 = vand.u32 4294901760, %v68_v8  ;;  %v6506_v12 = vand.u32 4294901760, %v67_v9  ;;  %v66_v13 = vld [vmem:[#allocation6 + $0x28] sm:$0xff]  ;;  %v65_v14 = vld [vmem:[#allocation6 + $0x20] sm:$0xff]  ;;  %5252 = vmatprep.subr.mxu0 %v6496_v4  ;;  %v6510_v15 = vsub.f32 %v72_v1, %v6496_v4  ;;  %v64_v19 = vld [vmem:[#allocation6 + $0x18] sm:$0xff] }
  0x20   :  { %v6513_v16 = vsub.f32 %v71_v2, %v6498_v5  ;;  %v6515_v17 = vand.u32 4294901760, %v66_v13  ;;  %v6518_v18 = vsub.f32 %v70_v3, %v6500_v6  ;;  %5253 = vmatpush3.msra.mxu0 %v6496_v4  ;;  %v45_v22 = vld [vmem:[#allocation3] sm:$0xff]  ;;  %v46_v23 = vld [vmem:[#allocation3 + $0x8] sm:$0xff]  ;;  %v6537_v27 = vand.u32 4294901760, %v65_v14  ;;  %v62_v41 = vld [vmem:[#allocation6 + $0x8] sm:$0xff] }
  0x21   :  { %v6522_v20 = vsub.f32 %v69_v7, %v6502_v10  ;;  %v6525_v21 = vsub.f32 %v68_v8, %v6504_v11  ;;  %5254 = vmatprep.subr.mxu0 %v6498_v5  ;;  %v6529_v24 = vand.u32 4294901760, %v6510_v15  ;;  %48 = vst.msk [vmem:[#allocation2 + $0x3] sm:$0xff] %vm47_vm1, %v45_v22  ;;  %49 = vst.msk [vmem:[#allocation2 + $0xb] sm:$0xff] %vm47_vm1, %v46_v23  ;;  %v6545_v29 = vand.u32 4294901760, %v64_v19  ;;  %v63_v35 = vld [vmem:[#allocation6 + $0x10] sm:$0xff]  ;;  %v61_v47 = vld [vmem:[#allocation6] sm:$0xff] }
  0x22   :  { %v6532_v25 = vand.u32 4294901760, %v6513_v16  ;;  %v6535_v26 = vand.u32 4294901760, %v6518_v18  ;;  %5255 = vmatpush3.msra.mxu0 %v6498_v5  ;;  %v6551_v31 = vsub.f32 %v67_v9, %v6506_v12  ;;  %v6561_v36 = vsub.f32 %v66_v13, %v6515_v17 }
  0x23   :  { %v6543_v28 = vand.u32 4294901760, %v6522_v20  ;;  %v6548_v30 = vand.u32 4294901760, %v6525_v21  ;;  %5256 = vmatprep.subr.mxu0 %v6500_v6  ;;  %v188_v32 = vsub.f32 %v6510_v15, %v6529_v24  ;;  %v6571_v42 = vand.u32 4294901760, %v63_v35 }
  0x24   :  { %v195_v33 = vsub.f32 %v6513_v16, %v6532_v25  ;;  %v202_v34 = vsub.f32 %v6518_v18, %v6535_v26  ;;  %5257 = vmatpush3.msra.mxu0 %v6500_v6  ;;  %v6568_v40 = vand.u32 4294901760, %v6551_v31  ;;  %v6574_v43 = vsub.f32 %v65_v14, %v6537_v27 }
  0x25   :  { %v209_v37 = vsub.f32 %v6522_v20, %v6543_v28  ;;  %5258 = vmatprep.subr.mxu0 %v6502_v10  ;;  %v189_v38 = vand.u32 4294901760, %v188_v32  ;;  %v216_v45 = vsub.f32 %v6525_v21, %v6548_v30  ;;  %v6580_v46 = vand.u32 4294901760, %v6561_v36 }
  0x26   :  { %v196_v39 = vand.u32 4294901760, %v195_v33  ;;  %5259 = vmatpush3.msra.mxu0 %v6502_v10  ;;  %v203_v44 = vand.u32 4294901760, %v202_v34  ;;  %v6583_v48 = vsub.f32 %v64_v19, %v6545_v29  ;;  %v6586_v50 = vand.u32 4294901760, %v62_v41 }
  0x27   :  { %5260 = vmatprep.subr.mxu0 %v6504_v11  ;;  %5279 = vmatprep.subr.mxu1 %v189_v38  ;;  %v210_v49 = vand.u32 4294901760, %v209_v37  ;;  %v223_v53 = vsub.f32 %v6551_v31, %v6568_v40  ;;  %v6592_v54 = vand.u32 4294901760, %v6574_v43  ;;  %v6597_v57 = vand.u32 4294901760, %v61_v47 }
  0x28   :  { %5261 = vmatpush3.msra.mxu0 %v6504_v11  ;;  %5280 = vmatpush3.msra.mxu1 %v189_v38  ;;  %v59_v51 = vld [vmem:[#allocation2] sm:$0xff]  ;;  %v60_v52 = vld [vmem:[#allocation2 + $0x8] sm:$0xff]  ;;  %v6604_v60 = vsub.f32 %v63_v35, %v6571_v42  ;;  %v217_v61 = vand.u32 4294901760, %v216_v45  ;;  %v230_v62 = vsub.f32 %v6561_v36, %v6580_v46  ;;  %v6610_v63 = vand.u32 4294901760, %v6583_v48 }
  0x29   :  { %5262 = vmatprep.subr.mxu0 %v6506_v12  ;;  %5281 = vmatprep.subr.mxu1 %v196_v39  ;;  %v74_v55 = vsel %vm47_vm1, %v59_v51, 0  ;;  %v77_v56 = vsel %vm47_vm1, %v60_v52, 0  ;;  %v6620_v2 = vsub.f32 %v62_v41, %v6586_v50  ;;  %v224_v3 = vand.u32 4294901760, %v223_v53  ;;  %v719_v53 = vld [vmem:[#allocation6 + $0x78] sm:$0xff] }
  0x2a   :  { %5263 = vmatpush3.msra.mxu0 %v6506_v12  ;;  %5282 = vmatpush3.msra.mxu1 %v196_v39  ;;  %v6599_v58 = vand.u32 4294901760, %v74_v55  ;;  %v6601_v59 = vand.u32 4294901760, %v77_v56  ;;  %v237_v7 = vsub.f32 %v6574_v43, %v6592_v54  ;;  %v6629_v13 = vand.u32 4294901760, %v6604_v60 }
  0x2b   :  { %5264 = vmatprep.subr.mxu0 %v6515_v17  ;;  %5283 = vmatprep.subr.mxu1 %v203_v44  ;;  %v6632_v14 = vsub.f32 %v61_v47, %v6597_v57  ;;  %v231_v19 = vand.u32 4294901760, %v230_v62  ;;  %v244_v22 = vsub.f32 %v6583_v48, %v6610_v63  ;;  %v6645_v33 = vand.u32 4294901760, %v6620_v2 }
  0x2c   :  { %5265 = vmatpush3.msra.mxu0 %v6515_v17  ;;  %5284 = vmatpush3.msra.mxu1 %v203_v44  ;;  %v6614_v0 = vsub.f32 %v74_v55, %v6599_v58  ;;  %v6617_v1 = vsub.f32 %v77_v56, %v6601_v59  ;;  %v238_v34 = vand.u32 4294901760, %v237_v7  ;;  %v251_v35 = vsub.f32 %v6604_v60, %v6629_v13 }
  0x2d   :  { %5266 = vmatprep.subr.mxu0 %v6537_v27  ;;  %5285 = vmatprep.subr.mxu1 %v210_v49  ;;  %v6652_v37 = vand.u32 4294901760, %v6632_v14  ;;  %v245_v39 = vand.u32 4294901760, %v244_v22  ;;  %v258_v44 = vsub.f32 %v6620_v2, %v6645_v33 }
  0x2e   :  { %5267 = vmatpush3.msra.mxu0 %v6537_v27  ;;  %5286 = vmatpush3.msra.mxu1 %v210_v49  ;;  %v158_v8 = vand.u32 4294901760, %v6614_v0  ;;  %v168_v9 = vand.u32 4294901760, %v6617_v1  ;;  %v252_v45 = vand.u32 4294901760, %v251_v35 }
  0x2f   :  { %5268 = vmatprep.subr.mxu0 %v6545_v29  ;;  %5287 = vmatprep.subr.mxu1 %v217_v61  ;;  %v265_v47 = vsub.f32 %v6632_v14, %v6652_v37  ;;  %v259_v49 = vand.u32 4294901760, %v258_v44 }
  0x30   :  { %5269 = vmatpush3.msra.mxu0 %v6545_v29  ;;  %5288 = vmatpush3.msra.mxu1 %v217_v61  ;;  %v159_v23 = vsub.f32 %v6614_v0, %v158_v8  ;;  %v169_v32 = vsub.f32 %v6617_v1, %v168_v9 }
  0x31   :  { %5270 = vmatprep.subr.mxu0 %v6571_v42  ;;  %5289 = vmatprep.subr.mxu1 %v224_v3  ;;  %v266_v51 = vand.u32 4294901760, %v265_v47 }
  0x32   :  { %5271 = vmatpush3.msra.mxu0 %v6571_v42  ;;  %5290 = vmatpush3.msra.mxu1 %v224_v3  ;;  %v160_v38 = vand.u32 4294901760, %v159_v23  ;;  %v170_v41 = vand.u32 4294901760, %v169_v32  ;;  %v716_v32 = vld [vmem:[#allocation6 + $0x60] sm:$0xff] }
  0x33   :  { %5272 = vmatprep.subr.mxu0 %v6586_v50  ;;  %5291 = vmatprep.subr.mxu1 %v231_v19 }
  0x34   :  { %5273 = vmatpush3.msra.mxu0 %v6586_v50  ;;  %5292 = vmatpush3.msra.mxu1 %v231_v19 }
  0x35   :  { %5274 = vmatprep.subr.mxu0 %v6597_v57  ;;  %5293 = vmatprep.subr.mxu1 %v238_v34 }
  0x36   :  { %5275 = vmatpush3.msra.mxu0 %v6597_v57  ;;  %5294 = vmatpush3.msra.mxu1 %v238_v34 }
  0x37   :  { %5276 = vmatprep.mubr.f32.mxu0 %v160_v38  ;;  %5295 = vmatprep.subr.mxu1 %v245_v39 }
  0x38   :  { %5306 = vmatprep.subr.mxu0 %v6510_v15  ;;  %5277 = vmatmul.mubr.f32.vlgmr.msra.gmra.mxu0 %v170_v41  ;;  %v6879_v41 = vand.u32 4294901760, %v716_v32 }
  0x39   :  { %5296 = vmatpush3.msra.mxu1 %v245_v39  ;;  %5307 = vmatpush3.msra.mxu0 %v6510_v15  ;;  %v727_v15 = vld [vmem:[#allocation6 + $0xb8] sm:$0xff] }
  0x3a   :  { %5297 = vmatprep.subr.mxu1 %v252_v45  ;;  %5308 = vmatprep.subr.mxu0 %v6513_v16 }
  0x3b   :  { %5298 = vmatpush3.msra.mxu1 %v252_v45  ;;  %5309 = vmatpush3.msra.mxu0 %v6513_v16  ;;  %v726_v16 = vld [vmem:[#allocation6 + $0xb0] sm:$0xff] }
  0x3c   :  { %5299 = vmatprep.subr.mxu1 %v259_v49  ;;  %5310 = vmatprep.subr.mxu0 %v6518_v18 }
  0x3d   :  { %5300 = vmatpush3.msra.mxu1 %v259_v49  ;;  %5311 = vmatpush3.msra.mxu0 %v6518_v18  ;;  %v725_v18 = vld [vmem:[#allocation6 + $0xa8] sm:$0xff] }
  0x3e   :  { %5301 = vmatprep.subr.mxu1 %v266_v51  ;;  %5312 = vmatprep.subr.mxu0 %v6522_v20 }
  0x3f   :  { %5302 = vmatpush3.msra.mxu1 %v266_v51  ;;  %5303 = vmatprep.mubr.f32.mxu1 %v6599_v58 }
  0x40   :  { %5313 = vmatpush3.msra.mxu0 %v6522_v20  ;;  %5304 = vmatmul.mubr.f32.vlgmr.msra.gmra.mxu1 %v6601_v59  ;;  %v724_v20 = vld [vmem:[#allocation6 + $0xa0] sm:$0xff] }
  0x41   :  { %5314 = vmatprep.subr.mxu0 %v6525_v21  ;;  %5333 = vmatprep.subr.mxu1 %v6496_v4 }
  0x42   :  { %5315 = vmatpush3.msra.mxu0 %v6525_v21  ;;  %5334 = vmatpush3.msra.mxu1 %v6496_v4 }
  0x43   :  { %5316 = vmatprep.subr.mxu0 %v6551_v31  ;;  %5335 = vmatprep.subr.mxu1 %v6498_v5 }
  0x44   :  { %5317 = vmatpush3.msra.mxu0 %v6551_v31  ;;  %5336 = vmatpush3.msra.mxu1 %v6498_v5 }
  0x45   :  { %5318 = vmatprep.subr.mxu0 %v6561_v36  ;;  %5337 = vmatprep.subr.mxu1 %v6500_v6 }
  0x46   :  { %5319 = vmatpush3.msra.mxu0 %v6561_v36  ;;  %5338 = vmatpush3.msra.mxu1 %v6500_v6  ;;  %v720_v36 = vld [vmem:[#allocation6 + $0x80] sm:$0xff] }
  0x47   :  { %5320 = vmatprep.subr.mxu0 %v6574_v43  ;;  %5339 = vmatprep.subr.mxu1 %v6502_v10  ;;  %v6806_v55 = vand.u32 4294901760, %v720_v36 }
  0x48   :  { %5321 = vmatpush3.msra.mxu0 %v6574_v43  ;;  %5340 = vmatpush3.msra.mxu1 %v6502_v10  ;;  %v713_v43 = vld [vmem:[#allocation2 + $0x1] sm:$0xff] }
  0x49   :  { %5322 = vmatprep.subr.mxu0 %v6583_v48  ;;  %5341 = vmatprep.subr.mxu1 %v6504_v11  ;;  %v729_v56 = vsel %vm47_vm1, %v713_v43, 0  ;;  %v6848_v19 = vsub.f32 %v720_v36, %v6806_v55 }
  0x4a   :  { %5323 = vmatpush3.msra.mxu0 %v6583_v48  ;;  %5342 = vmatpush3.msra.mxu1 %v6504_v11  ;;  %v6834_v7 = vand.u32 4294901760, %v729_v56 }
  0x4b   :  { %5324 = vmatprep.subr.mxu0 %v6604_v60  ;;  %5343 = vmatprep.subr.mxu1 %v6506_v12  ;;  %v6876_v39 = vand.u32 4294901760, %v6848_v19 }
  0x4c   :  { %5325 = vmatpush3.msra.mxu0 %v6604_v60  ;;  %5344 = vmatpush3.msra.mxu1 %v6506_v12 }
  0x4d   :  { %5326 = vmatprep.subr.mxu0 %v6620_v2  ;;  %5345 = vmatprep.subr.mxu1 %v6515_v17 }
  0x4e   :  { %5327 = vmatpush3.msra.mxu0 %v6620_v2  ;;  %5346 = vmatpush3.msra.mxu1 %v6515_v17  ;;  %v718_v2 = vld [vmem:[#allocation6 + $0x70] sm:$0xff] }
  0x4f   :  { %5328 = vmatprep.subr.mxu0 %v6632_v14  ;;  %5347 = vmatprep.subr.mxu1 %v6537_v27  ;;  %v6852_v23 = vand.u32 4294901760, %v718_v2 }
  0x50   :  { %5329 = vmatpush3.msra.mxu0 %v6632_v14  ;;  %5330 = vmatprep.mubr.f32.mxu0 %v6614_v0  ;;  %v717_v14 = vld [vmem:[#allocation6 + $0x68] sm:$0xff] }
  0x51   :  { %5348 = vmatpush3.msra.mxu1 %v6537_v27  ;;  %5331 = vmatmul.mubr.f32.vlgmr.msra.gmra.mxu0 %v6617_v1  ;;  %v6882_v44 = vsub.f32 %v718_v2, %v6852_v23 }
  0x52   :  { %5349 = vmatprep.subr.mxu1 %v6545_v29  ;;  %5360 = vmatprep.subr.mxu0 %v6529_v24 }
  0x53   :  { %5350 = vmatpush3.msra.mxu1 %v6545_v29  ;;  %5361 = vmatpush3.msra.mxu0 %v6529_v24 }
  0x54   :  { %5351 = vmatprep.subr.mxu1 %v6571_v42  ;;  %5362 = vmatprep.subr.mxu0 %v6532_v25 }
  0x55   :  { %5352 = vmatpush3.msra.mxu1 %v6571_v42  ;;  %5363 = vmatpush3.msra.mxu0 %v6532_v25  ;;  %v722_v25 = vld [vmem:[#allocation6 + $0x90] sm:$0xff] }
  0x56   :  { %5353 = vmatprep.subr.mxu1 %v6586_v50  ;;  %5364 = vmatprep.subr.mxu0 %v6535_v26 }
  0x57   :  { %5354 = vmatpush3.msra.mxu1 %v6586_v50  ;;  %5365 = vmatpush3.msra.mxu0 %v6535_v26 }
  0x58   :  { %5355 = vmatprep.subr.mxu1 %v6597_v57  ;;  %5366 = vmatprep.subr.mxu0 %v6543_v28 }
  0x59   :  { %5356 = vmatpush3.msra.mxu1 %v6597_v57  ;;  %5357 = vmatprep.mubr.f32.mxu1 %v158_v8 }
  0x5a   :  { %5367 = vmatpush3.msra.mxu0 %v6543_v28  ;;  %5358 = vmatmul.mubr.f32.vlgmr.msra.gmra.mxu1 %v168_v9 }
  0x5b   :  { %5368 = vmatprep.subr.mxu0 %v6548_v30  ;;  %5387 = vmatprep.subr.mxu1 %v6496_v4 }
  0x5c   :  { %5369 = vmatpush3.msra.mxu0 %v6548_v30  ;;  %5388 = vmatpush3.msra.mxu1 %v6496_v4  ;;  %v6740_v4 = vand.u32 4294901760, %v727_v15  ;;  %v721_v30 = vld [vmem:[#allocation6 + $0x88] sm:$0xff] }
  0x5d   :  { %5370 = vmatprep.subr.mxu0 %v6568_v40  ;;  %5389 = vmatprep.subr.mxu1 %v6498_v5  ;;  %v6799_v52 = vand.u32 4294901760, %v721_v30 }
  0x5e   :  { %5371 = vmatpush3.msra.mxu0 %v6568_v40  ;;  %5390 = vmatpush3.msra.mxu1 %v6498_v5  ;;  %v6746_v5 = vand.u32 4294901760, %v726_v16  ;;  %v6755_v21 = vsub.f32 %v727_v15, %v6740_v4 }
  0x5f   :  { %5372 = vmatprep.subr.mxu0 %v6580_v46  ;;  %5391 = vmatprep.subr.mxu1 %v6500_v6  ;;  %v6832_v3 = vsub.f32 %v721_v30, %v6799_v52 }
  0x60   :  { %5373 = vmatpush3.msra.mxu0 %v6580_v46  ;;  %5392 = vmatpush3.msra.mxu1 %v6500_v6  ;;  %v6750_v6 = vand.u32 4294901760, %v725_v18  ;;  %v6764_v24 = vsub.f32 %v726_v16, %v6746_v5  ;;  %v6776_v28 = vand.u32 4294901760, %v6755_v21 }
  0x61   :  { %5374 = vmatprep.subr.mxu0 %v6592_v54  ;;  %5393 = vmatprep.subr.mxu1 %v6502_v10 }
  0x62   :  { %5375 = vmatpush3.msra.mxu0 %v6592_v54  ;;  %5394 = vmatpush3.msra.mxu1 %v6502_v10  ;;  %v723_v10 = vld [vmem:[#allocation6 + $0x98] sm:$0xff]  ;;  %v6769_v26 = vsub.f32 %v725_v18, %v6750_v6  ;;  %v6785_v31 = vand.u32 4294901760, %v6764_v24  ;;  %v843_v48 = vsub.f32 %v6755_v21, %v6776_v28 }
  0x63   :  { %5376 = vmatprep.subr.mxu0 %v6610_v63  ;;  %5395 = vmatprep.subr.mxu1 %v6504_v11 }
  0x64   :  { %5377 = vmatpush3.msra.mxu0 %v6610_v63  ;;  %5396 = vmatpush3.msra.mxu1 %v6504_v11  ;;  %v6761_v11 = vand.u32 4294901760, %v724_v20  ;;  %v6793_v46 = vand.u32 4294901760, %v6769_v26  ;;  %v6824_v63 = vand.u32 4294901760, %v719_v53  ;;  %v844_v0 = vand.u32 4294901760, %v843_v48 }
  0x65   :  { %5378 = vmatprep.subr.mxu0 %v6629_v13  ;;  %5397 = vmatprep.subr.mxu1 %v6506_v12 }
  0x66   :  { %5379 = vmatpush3.msra.mxu0 %v6629_v13  ;;  %5398 = vmatpush3.msra.mxu1 %v6506_v12  ;;  %v6773_v12 = vand.u32 4294901760, %v723_v10  ;;  %v6788_v40 = vsub.f32 %v724_v20, %v6761_v11  ;;  %v6864_v34 = vsub.f32 %v719_v53, %v6824_v63  ;;  %v892_v20 = vsub.f32 %v6848_v19, %v6876_v39 }
  0x67   :  { %5380 = vmatprep.subr.mxu0 %v6645_v33  ;;  %5399 = vmatprep.subr.mxu1 %v6515_v17 }
  0x68   :  { %5381 = vmatpush3.msra.mxu0 %v6645_v33  ;;  %5400 = vmatpush3.msra.mxu1 %v6515_v17  ;;  %v6782_v17 = vand.u32 4294901760, %v722_v25  ;;  %v6802_v54 = vsub.f32 %v723_v10, %v6773_v12  ;;  %v6814_v60 = vand.u32 4294901760, %v6788_v40  ;;  %v6861_v33 = vsub.f32 %v729_v56, %v6834_v7 }
  0x69   :  { %5382 = vmatprep.subr.mxu0 %v6652_v37  ;;  %5401 = vmatprep.subr.mxu1 %v6537_v27  ;;  %v6889_v51 = vand.u32 4294901760, %v6864_v34  ;;  %v6901_v10 = vand.u32 4294901760, %v6882_v44  ;;  %v893_v53 = vand.u32 4294901760, %v892_v20 }
  0x6a   :  { %5383 = vmatpush3.msra.mxu0 %v6652_v37  ;;  %5384 = vmatprep.mubr.f32.mxu0 %v6599_v58  ;;  %v6817_v61 = vsub.f32 %v722_v25, %v6782_v17  ;;  %v6829_v1 = vand.u32 4294901760, %v6802_v54  ;;  %v864_v9 = vsub.f32 %v6788_v40, %v6814_v60  ;;  %v813_v49 = vand.u32 4294901760, %v6861_v33 }
  0x6b   :  { %5402 = vmatpush3.msra.mxu1 %v6537_v27  ;;  %5385 = vmatmul.mubr.f32.vlgmr.msra.gmra.mxu0 %v6601_v59  ;;  %v714_v27 = vld [vmem:[#allocation2 + $0x9] sm:$0xff]  ;;  %v6904_v25 = vsub.f32 %v716_v32, %v6879_v41  ;;  %v899_v43 = vsub.f32 %v6864_v34, %v6889_v51  ;;  %v906_v56 = vsub.f32 %v6882_v44, %v6901_v10 }
  0x6c   :  { %5403 = vmatprep.subr.mxu1 %v6545_v29  ;;  %5414 = vmatprep.subr.mxu0 %v6740_v4  ;;  %v732_v62 = vsel %vm47_vm1, %v714_v27, 0  ;;  %v6845_v13 = vand.u32 4294901760, %v6817_v61  ;;  %v865_v37 = vand.u32 4294901760, %v864_v9  ;;  %v814_v36 = vsub.f32 %v6861_v33, %v813_v49 }
  0x6d   :  { %5404 = vmatpush3.msra.mxu1 %v6545_v29  ;;  %5415 = vmatpush3.msra.mxu0 %v6740_v4  ;;  %v850_v29 = vsub.f32 %v6764_v24, %v6785_v31  ;;  %v6838_v8 = vand.u32 4294901760, %v732_v62 }
  0x6e   :  { %5405 = vmatprep.subr.mxu1 %v6571_v42  ;;  %5416 = vmatprep.subr.mxu0 %v6746_v5  ;;  %v878_v38 = vsub.f32 %v6817_v61, %v6845_v13 }
  0x6f   :  { %5406 = vmatpush3.msra.mxu1 %v6571_v42  ;;  %5417 = vmatpush3.msra.mxu0 %v6746_v5  ;;  %v857_v42 = vsub.f32 %v6769_v26, %v6793_v46  ;;  %v6870_v35 = vsub.f32 %v732_v62, %v6838_v8  ;;  %v815_v62 = vand.u32 4294901760, %v814_v36 }
  0x70   :  { %5407 = vmatprep.subr.mxu1 %v6586_v50  ;;  %5418 = vmatprep.subr.mxu0 %v6750_v6  ;;  %v879_v18 = vand.u32 4294901760, %v878_v38 }
  0x71   :  { %5408 = vmatpush3.msra.mxu1 %v6586_v50  ;;  %5419 = vmatpush3.msra.mxu0 %v6750_v6  ;;  %v851_v50 = vand.u32 4294901760, %v850_v29  ;;  %v858_v22 = vand.u32 4294901760, %v857_v42  ;;  %v823_v15 = vand.u32 4294901760, %v6870_v35  ;;  %v6924_v29 = vand.u32 4294901760, %v6904_v25 }
  0x72   :  { %5409 = vmatprep.subr.mxu1 %v6597_v57  ;;  %5420 = vmatprep.subr.mxu0 %v6761_v11  ;;  %v900_v42 = vand.u32 4294901760, %v899_v43 }
  0x73   :  { %5410 = vmatpush3.msra.mxu1 %v6597_v57  ;;  %5411 = vmatprep.mubr.f32.mxu1 %v6599_v58  ;;  %v871_v57 = vsub.f32 %v6802_v54, %v6829_v1  ;;  %v6858_v58 = vand.u32 4294901760, %v6832_v3  ;;  %v824_v27 = vsub.f32 %v6870_v35, %v823_v15  ;;  %v920_v9 = vsub.f32 %v6904_v25, %v6924_v29 }
  0x74   :  { %5421 = vmatpush3.msra.mxu0 %v6761_v11  ;;  %5412 = vmatmul.mubr.f32.vlgmr.msra.gmra.mxu1 %v6601_v59  ;;  %v6867_v59 = vand.u32 4294901760, %v717_v14 }
  0x75   :  { %5422 = vmatprep.subr.mxu0 %v6773_v12  ;;  %5441 = vmatprep.subr.mxu1 %v844_v0  ;;  %v872_v45 = vand.u32 4294901760, %v871_v57  ;;  %v885_v47 = vsub.f32 %v6832_v3, %v6858_v58  ;;  %v1375_v57 = vld [vmem:[#allocation6 + $0xe0] sm:$0xff] }
  0x76   :  { %5423 = vmatpush3.msra.mxu0 %v6773_v12  ;;  %5442 = vmatpush3.msra.mxu1 %v844_v0  ;;  %v6894_v16 = vsub.f32 %v717_v14, %v6867_v59  ;;  %v825_v0 = vand.u32 4294901760, %v824_v27  ;;  %v7086_v38 = vand.u32 4294901760, %v1375_v57  ;;  %v1371_v27 = vld [vmem:[#allocation6 + $0xc0] sm:$0xff] }
  0x77   :  { %5424 = vmatprep.subr.mxu0 %v6782_v17  ;;  %5443 = vmatprep.subr.mxu1 %v851_v50  ;;  %v886_v30 = vand.u32 4294901760, %v885_v47 }
  0x78   :  { %5425 = vmatpush3.msra.mxu0 %v6782_v17  ;;  %5444 = vmatpush3.msra.mxu1 %v851_v50  ;;  %v6917_v48 = vand.u32 4294901760, %v6894_v16  ;;  %v907_v50 = vand.u32 4294901760, %v906_v56 }
  0x79   :  { %5426 = vmatprep.subr.mxu0 %v6799_v52  ;;  %5445 = vmatprep.subr.mxu1 %v858_v22 }
  0x7a   :  { %5427 = vmatpush3.msra.mxu0 %v6799_v52  ;;  %5446 = vmatpush3.msra.mxu1 %v858_v22  ;;  %v913_v2 = vsub.f32 %v6894_v16, %v6917_v48  ;;  %v921_v22 = vand.u32 4294901760, %v920_v9 }
  0x7b   :  { %5428 = vmatprep.subr.mxu0 %v6806_v55  ;;  %5447 = vmatprep.subr.mxu1 %v865_v37 }
  0x7c   :  { %5429 = vmatpush3.msra.mxu0 %v6806_v55  ;;  %5448 = vmatpush3.msra.mxu1 %v865_v37  ;;  %v914_v14 = vand.u32 4294901760, %v913_v2 }
  0x7d   :  { %5430 = vmatprep.subr.mxu0 %v6824_v63  ;;  %5449 = vmatprep.subr.mxu1 %v872_v45 }
  0x7e   :  { %5431 = vmatpush3.msra.mxu0 %v6824_v63  ;;  %5450 = vmatpush3.msra.mxu1 %v872_v45 }
  0x7f   :  { %5432 = vmatprep.subr.mxu0 %v6852_v23  ;;  %5451 = vmatprep.subr.mxu1 %v879_v18 }
  0x80   :  { %5433 = vmatpush3.msra.mxu0 %v6852_v23  ;;  %5452 = vmatpush3.msra.mxu1 %v879_v18 }
  0x81   :  { %5434 = vmatprep.subr.mxu0 %v6867_v59  ;;  %5453 = vmatprep.subr.mxu1 %v886_v30 }
  0x82   :  { %5435 = vmatpush3.msra.mxu0 %v6867_v59  ;;  %5454 = vmatpush3.msra.mxu1 %v886_v30  ;;  %v7120_v30 = vsub.f32 %v1375_v57, %v7086_v38 }
  0x83   :  { %5436 = vmatprep.subr.mxu0 %v6879_v41  ;;  %5455 = vmatprep.subr.mxu1 %v893_v53 }
  0x84   :  { %5437 = vmatpush3.msra.mxu0 %v6879_v41  ;;  %5456 = vmatpush3.msra.mxu1 %v893_v53 }
  0x85   :  { %5438 = vmatprep.mubr.f32.mxu0 %v815_v62  ;;  %5457 = vmatprep.subr.mxu1 %v900_v42 }
  0x86   :  { %5468 = vmatprep.subr.mxu0 %v6755_v21  ;;  %5439 = vmatmul.mubr.f32.vlgmr.msra.gmra.mxu0 %v825_v0  ;;  %v7151_v0 = vand.u32 4294901760, %v1371_v27 }
  0x87   :  { %5458 = vmatpush3.msra.mxu1 %v900_v42  ;;  %5469 = vmatpush3.msra.mxu0 %v6755_v21  ;;  %v1382_v21 = vld [vmem:[#allocation6 + $0x118] sm:$0xff]  ;;  %v7148_v42 = vand.u32 4294901760, %v7120_v30 }
  0x88   :  { %5459 = vmatprep.subr.mxu1 %v907_v50  ;;  %5470 = vmatprep.subr.mxu0 %v6764_v24 }
  0x89   :  { %5460 = vmatpush3.msra.mxu1 %v907_v50  ;;  %5471 = vmatpush3.msra.mxu0 %v6764_v24  ;;  %v1381_v24 = vld [vmem:[#allocation6 + $0x110] sm:$0xff] }
  0x8a   :  { %5461 = vmatprep.subr.mxu1 %v914_v14  ;;  %5472 = vmatprep.subr.mxu0 %v6769_v26 }
  0x8b   :  { %5462 = vmatpush3.msra.mxu1 %v914_v14  ;;  %5473 = vmatpush3.msra.mxu0 %v6769_v26  ;;  %v1380_v26 = vld [vmem:[#allocation6 + $0x108] sm:$0xff] }
  0x8c   :  { %5463 = vmatprep.subr.mxu1 %v921_v22  ;;  %5474 = vmatprep.subr.mxu0 %v6788_v40 }
  0x8d   :  { %5464 = vmatpush3.msra.mxu1 %v921_v22  ;;  %5465 = vmatprep.mubr.f32.mxu1 %v6834_v7 }
  0x8e   :  { %5475 = vmatpush3.msra.mxu0 %v6788_v40  ;;  %5466 = vmatmul.mubr.f32.vlgmr.msra.gmra.mxu1 %v6838_v8 }
  0x8f   :  { %5476 = vmatprep.subr.mxu0 %v6802_v54  ;;  %5495 = vmatprep.subr.mxu1 %v6740_v4 }
  0x90   :  { %5477 = vmatpush3.msra.mxu0 %v6802_v54  ;;  %5496 = vmatpush3.msra.mxu1 %v6740_v4  ;;  %v1377_v54 = vld [vmem:[#allocation6 + $0xf0] sm:$0xff] }
  0x91   :  { %5478 = vmatprep.subr.mxu0 %v6817_v61  ;;  %5497 = vmatprep.subr.mxu1 %v6746_v5 }
  0x92   :  { %5479 = vmatpush3.msra.mxu0 %v6817_v61  ;;  %5498 = vmatpush3.msra.mxu1 %v6746_v5  ;;  %v1376_v61 = vld [vmem:[#allocation6 + $0xe8] sm:$0xff] }
  0x93   :  { %5480 = vmatprep.subr.mxu0 %v6832_v3  ;;  %5499 = vmatprep.subr.mxu1 %v6750_v6 }
  0x94   :  { %5481 = vmatpush3.msra.mxu0 %v6832_v3  ;;  %5500 = vmatpush3.msra.mxu1 %v6750_v6 }
  0x95   :  { %5482 = vmatprep.subr.mxu0 %v6848_v19  ;;  %5501 = vmatprep.subr.mxu1 %v6761_v11 }
  0x96   :  { %5483 = vmatpush3.msra.mxu0 %v6848_v19  ;;  %5502 = vmatpush3.msra.mxu1 %v6761_v11 }
  0x97   :  { %5484 = vmatprep.subr.mxu0 %v6864_v34  ;;  %5503 = vmatprep.subr.mxu1 %v6773_v12 }
  0x98   :  { %5485 = vmatpush3.msra.mxu0 %v6864_v34  ;;  %5504 = vmatpush3.msra.mxu1 %v6773_v12 }
  0x99   :  { %5486 = vmatprep.subr.mxu0 %v6882_v44  ;;  %5505 = vmatprep.subr.mxu1 %v6782_v17 }
  0x9a   :  { %5487 = vmatpush3.msra.mxu0 %v6882_v44  ;;  %5506 = vmatpush3.msra.mxu1 %v6782_v17 }
  0x9b   :  { %5488 = vmatprep.subr.mxu0 %v6894_v16  ;;  %5507 = vmatprep.subr.mxu1 %v6799_v52 }
  0x9c   :  { %5489 = vmatpush3.msra.mxu0 %v6894_v16  ;;  %5508 = vmatpush3.msra.mxu1 %v6799_v52 }
  0x9d   :  { %5490 = vmatprep.subr.mxu0 %v6904_v25  ;;  %5509 = vmatprep.subr.mxu1 %v6806_v55 }
  0x9e   :  { %5491 = vmatpush3.msra.mxu0 %v6904_v25  ;;  %5492 = vmatprep.mubr.f32.mxu0 %v6861_v33  ;;  %v7074_v33 = vand.u32 4294901760, %v1376_v61  ;;  %v1372_v25 = vld [vmem:[#allocation6 + $0xc8] sm:$0xff] }
  0x9f   :  { %5510 = vmatpush3.msra.mxu1 %v6806_v55  ;;  %5493 = vmatmul.mubr.f32.vlgmr.msra.gmra.mxu0 %v6870_v35  ;;  %v1374_v35 = vld [vmem:[#allocation6 + $0xd8] sm:$0xff] }
  0xa0   :  { %5511 = vmatprep.subr.mxu1 %v6824_v63  ;;  %5522 = vmatprep.subr.mxu0 %v6776_v28 }
  0xa1   :  { %5512 = vmatpush3.msra.mxu1 %v6824_v63  ;;  %5523 = vmatpush3.msra.mxu0 %v6776_v28  ;;  %v1379_v28 = vld [vmem:[#allocation6 + $0x100] sm:$0xff] }
  0xa2   :  { %5513 = vmatprep.subr.mxu1 %v6852_v23  ;;  %5524 = vmatprep.subr.mxu0 %v6785_v31  ;;  %v7031_v40 = vand.u32 4294901760, %v1379_v28 }
  0xa3   :  { %5514 = vmatpush3.msra.mxu1 %v6852_v23  ;;  %5525 = vmatpush3.msra.mxu0 %v6785_v31  ;;  %v1378_v31 = vld [vmem:[#allocation6 + $0xf8] sm:$0xff] }
  0xa4   :  { %5515 = vmatprep.subr.mxu1 %v6867_v59  ;;  %5526 = vmatprep.subr.mxu0 %v6793_v46 }
  0xa5   :  { %5516 = vmatpush3.msra.mxu1 %v6867_v59  ;;  %5527 = vmatpush3.msra.mxu0 %v6793_v46  ;;  %v7040_v46 = vand.u32 4294901760, %v1378_v31 }
  0xa6   :  { %5517 = vmatprep.subr.mxu1 %v6879_v41  ;;  %5528 = vmatprep.subr.mxu0 %v6814_v60 }
  0xa7   :  { %5518 = vmatpush3.msra.mxu1 %v6879_v41  ;;  %5519 = vmatprep.mubr.f32.mxu1 %v813_v49  ;;  %v7101_v49 = vand.u32 4294901760, %v1374_v35 }
  0xa8   :  { %5529 = vmatpush3.msra.mxu0 %v6814_v60  ;;  %5520 = vmatmul.mubr.f32.vlgmr.msra.gmra.mxu1 %v823_v15  ;;  %v7104_v15 = vsub.f32 %v1376_v61, %v7074_v33 }
  0xa9   :  { %5530 = vmatprep.subr.mxu0 %v6829_v1  ;;  %5549 = vmatprep.subr.mxu1 %v6740_v4  ;;  %v7136_v53 = vsub.f32 %v1374_v35, %v7101_v49 }
  0xaa   :  { %5531 = vmatpush3.msra.mxu0 %v6829_v1  ;;  %5550 = vmatpush3.msra.mxu1 %v6740_v4  ;;  %v7012_v4 = vand.u32 4294901760, %v1382_v21  ;;  %v7057_v1 = vand.u32 4294901760, %v1377_v54  ;;  %v7130_v43 = vand.u32 4294901760, %v7104_v15 }
  0xab   :  { %5532 = vmatprep.subr.mxu0 %v6845_v13  ;;  %5551 = vmatprep.subr.mxu1 %v6746_v5  ;;  %v7161_v22 = vand.u32 4294901760, %v7136_v53 }
  0xac   :  { %5533 = vmatpush3.msra.mxu0 %v6845_v13  ;;  %5552 = vmatpush3.msra.mxu1 %v6746_v5  ;;  %v7018_v5 = vand.u32 4294901760, %v1381_v24  ;;  %v1368_v13 = vld [vmem:[#allocation2 + $0x2] sm:$0xff]  ;;  %v1540_v9 = vsub.f32 %v7104_v15, %v7130_v43 }
  0xad   :  { %5534 = vmatprep.subr.mxu0 %v6858_v58  ;;  %5553 = vmatprep.subr.mxu1 %v6750_v6  ;;  %v1384_v37 = vsel %vm47_vm1, %v1368_v13, 0  ;;  %v1554_v57 = vsub.f32 %v7136_v53, %v7161_v22 }
  0xae   :  { %5535 = vmatpush3.msra.mxu0 %v6858_v58  ;;  %5554 = vmatpush3.msra.mxu1 %v6750_v6  ;;  %v7022_v6 = vand.u32 4294901760, %v1380_v26  ;;  %v7068_v58 = vsub.f32 %v1378_v31, %v7040_v46  ;;  %v7106_v16 = vand.u32 4294901760, %v1384_v37  ;;  %v1541_v61 = vand.u32 4294901760, %v1540_v9 }
  0xaf   :  { %5536 = vmatprep.subr.mxu0 %v6876_v39  ;;  %5555 = vmatprep.subr.mxu1 %v6761_v11 }
  0xb0   :  { %5537 = vmatpush3.msra.mxu0 %v6876_v39  ;;  %5556 = vmatpush3.msra.mxu1 %v6761_v11  ;;  %v7027_v11 = vsub.f32 %v1382_v21, %v7012_v4  ;;  %v7043_v60 = vsub.f32 %v1380_v26, %v7022_v6  ;;  %v7089_v39 = vsub.f32 %v1377_v54, %v7057_v1 }
  0xb1   :  { %5538 = vmatprep.subr.mxu0 %v6889_v51  ;;  %5557 = vmatprep.subr.mxu1 %v6773_v12  ;;  %v7176_v54 = vsub.f32 %v1371_v27, %v7151_v0 }
  0xb2   :  { %5539 = vmatpush3.msra.mxu0 %v6889_v51  ;;  %5558 = vmatpush3.msra.mxu1 %v6773_v12  ;;  %v7036_v12 = vsub.f32 %v1381_v24, %v7018_v5  ;;  %v7065_v19 = vand.u32 4294901760, %v7043_v60  ;;  %v1373_v51 = vld [vmem:[#allocation6 + $0xd0] sm:$0xff] }
  0xb3   :  { %5540 = vmatprep.subr.mxu0 %v6901_v10  ;;  %5559 = vmatprep.subr.mxu1 %v6782_v17  ;;  %v7126_v36 = vand.u32 4294901760, %v1373_v51 }
  0xb4   :  { %5541 = vmatpush3.msra.mxu0 %v6901_v10  ;;  %5560 = vmatpush3.msra.mxu1 %v6782_v17  ;;  %v7048_v17 = vand.u32 4294901760, %v7027_v11  ;;  %v7060_v3 = vand.u32 4294901760, %v7036_v12  ;;  %v1512_v45 = vsub.f32 %v7043_v60, %v7065_v19  ;;  %v7117_v10 = vand.u32 4294901760, %v7089_v39 }
  0xb5   :  { %5542 = vmatprep.subr.mxu0 %v6917_v48  ;;  %5561 = vmatprep.subr.mxu1 %v6799_v52  ;;  %v7154_v2 = vsub.f32 %v1373_v51, %v7126_v36 }
  0xb6   :  { %5543 = vmatpush3.msra.mxu0 %v6917_v48  ;;  %5562 = vmatpush3.msra.mxu1 %v6799_v52  ;;  %v7053_v52 = vsub.f32 %v1379_v28, %v7031_v40  ;;  %v1498_v32 = vsub.f32 %v7027_v11, %v7048_v17  ;;  %v7133_v48 = vsub.f32 %v1384_v37, %v7106_v16 }
  0xb7   :  { %5544 = vmatprep.subr.mxu0 %v6924_v29  ;;  %5563 = vmatprep.subr.mxu1 %v6806_v55  ;;  %v1533_v62 = vsub.f32 %v7089_v39, %v7117_v10  ;;  %v1547_v28 = vsub.f32 %v7120_v30, %v7148_v42  ;;  %v7173_v31 = vand.u32 4294901760, %v7154_v2 }
  0xb8   :  { %5545 = vmatpush3.msra.mxu0 %v6924_v29  ;;  %5546 = vmatprep.mubr.f32.mxu0 %v6834_v7  ;;  %v7079_v34 = vand.u32 4294901760, %v7053_v52  ;;  %v1499_v47 = vand.u32 4294901760, %v1498_v32  ;;  %v1468_v14 = vand.u32 4294901760, %v7133_v48 }
  0xb9   :  { %5564 = vmatpush3.msra.mxu1 %v6806_v55  ;;  %5547 = vmatmul.mubr.f32.vlgmr.msra.gmra.mxu0 %v6838_v8  ;;  %v1369_v55 = vld [vmem:[#allocation2 + $0xa] sm:$0xff]  ;;  %v1534_v26 = vand.u32 4294901760, %v1533_v62  ;;  %v1548_v35 = vand.u32 4294901760, %v1547_v28  ;;  %v1561_v37 = vsub.f32 %v7154_v2, %v7173_v31 }
  0xba   :  { %5565 = vmatprep.subr.mxu1 %v6824_v63  ;;  %5576 = vmatprep.subr.mxu0 %v7012_v4  ;;  %v1387_v44 = vsel %vm47_vm1, %v1369_v55, 0  ;;  %v1519_v20 = vsub.f32 %v7053_v52, %v7079_v34  ;;  %v1469_v13 = vsub.f32 %v7133_v48, %v1468_v14 }
  0xbb   :  { %5566 = vmatpush3.msra.mxu1 %v6824_v63  ;;  %5577 = vmatpush3.msra.mxu0 %v7012_v4  ;;  %v1505_v63 = vsub.f32 %v7036_v12, %v7060_v3  ;;  %v7110_v18 = vand.u32 4294901760, %v1387_v44 }
  0xbc   :  { %5567 = vmatprep.subr.mxu1 %v6852_v23  ;;  %5578 = vmatprep.subr.mxu0 %v7018_v5  ;;  %v1520_v29 = vand.u32 4294901760, %v1519_v20 }
  0xbd   :  { %5568 = vmatpush3.msra.mxu1 %v6852_v23  ;;  %5579 = vmatpush3.msra.mxu0 %v7018_v5  ;;  %v7097_v23 = vand.u32 4294901760, %v7068_v58  ;;  %v7142_v56 = vsub.f32 %v1387_v44, %v7110_v18  ;;  %v1470_v44 = vand.u32 4294901760, %v1469_v13 }
  0xbe   :  { %5569 = vmatprep.subr.mxu1 %v6867_v59  ;;  %5580 = vmatprep.subr.mxu0 %v7022_v6 }
  0xbf   :  { %5570 = vmatpush3.msra.mxu1 %v6867_v59  ;;  %5581 = vmatpush3.msra.mxu0 %v7022_v6  ;;  %v1506_v59 = vand.u32 4294901760, %v1505_v63  ;;  %v1478_v21 = vand.u32 4294901760, %v7142_v56  ;;  %v7196_v63 = vand.u32 4294901760, %v7176_v54 }
  0xc0   :  { %5571 = vmatprep.subr.mxu1 %v6879_v41  ;;  %5582 = vmatprep.subr.mxu0 %v7031_v40 }
  0xc1   :  { %5572 = vmatpush3.msra.mxu1 %v6879_v41  ;;  %5573 = vmatprep.mubr.f32.mxu1 %v6834_v7  ;;  %v1526_v41 = vsub.f32 %v7068_v58, %v7097_v23  ;;  %v1513_v7 = vand.u32 4294901760, %v1512_v45  ;;  %v1479_v55 = vsub.f32 %v7142_v56, %v1478_v21  ;;  %v1555_v45 = vand.u32 4294901760, %v1554_v57 }
  0xc2   :  { %5583 = vmatpush3.msra.mxu0 %v7031_v40  ;;  %5574 = vmatmul.mubr.f32.vlgmr.msra.gmra.mxu1 %v6838_v8  ;;  %v7139_v8 = vand.u32 4294901760, %v1372_v25  ;;  %v1575_v20 = vsub.f32 %v7176_v54, %v7196_v63 }
  0xc3   :  { %5584 = vmatprep.subr.mxu0 %v7040_v46  ;;  %5603 = vmatprep.subr.mxu1 %v1499_v47  ;;  %v1527_v50 = vand.u32 4294901760, %v1526_v41 }
  0xc4   :  { %5585 = vmatpush3.msra.mxu0 %v7040_v46  ;;  %5604 = vmatpush3.msra.mxu1 %v1499_v47  ;;  %v7166_v24 = vsub.f32 %v1372_v25, %v7139_v8  ;;  %v1480_v47 = vand.u32 4294901760, %v1479_v55  ;;  %v1576_v41 = vand.u32 4294901760, %v1575_v20  ;;  %v2026_v55 = vld [vmem:[#allocation6 + $0x120] sm:$0xff] }
  0xc5   :  { %5586 = vmatprep.subr.mxu0 %v7057_v1  ;;  %5605 = vmatprep.subr.mxu1 %v1506_v59 }
  0xc6   :  { %5587 = vmatpush3.msra.mxu0 %v7057_v1  ;;  %5606 = vmatpush3.msra.mxu1 %v1506_v59  ;;  %v7189_v32 = vand.u32 4294901760, %v7166_v24  ;;  %v1562_v59 = vand.u32 4294901760, %v1561_v37 }
  0xc7   :  { %5588 = vmatprep.subr.mxu0 %v7074_v33  ;;  %5607 = vmatprep.subr.mxu1 %v1513_v7 }
  0xc8   :  { %5589 = vmatpush3.msra.mxu0 %v7074_v33  ;;  %5608 = vmatpush3.msra.mxu1 %v1513_v7  ;;  %v1568_v51 = vsub.f32 %v7166_v24, %v7189_v32 }
  0xc9   :  { %5590 = vmatprep.subr.mxu0 %v7086_v38  ;;  %5609 = vmatprep.subr.mxu1 %v1520_v29 }
  0xca   :  { %5591 = vmatpush3.msra.mxu0 %v7086_v38  ;;  %5610 = vmatpush3.msra.mxu1 %v1520_v29  ;;  %v1569_v25 = vand.u32 4294901760, %v1568_v51 }
  0xcb   :  { %5592 = vmatprep.subr.mxu0 %v7101_v49  ;;  %5611 = vmatprep.subr.mxu1 %v1527_v50 }
  0xcc   :  { %5593 = vmatpush3.msra.mxu0 %v7101_v49  ;;  %5612 = vmatpush3.msra.mxu1 %v1527_v50 }
  0xcd   :  { %5594 = vmatprep.subr.mxu0 %v7126_v36  ;;  %5613 = vmatprep.subr.mxu1 %v1534_v26 }
  0xce   :  { %5595 = vmatpush3.msra.mxu0 %v7126_v36  ;;  %5614 = vmatpush3.msra.mxu1 %v1534_v26 }
  0xcf   :  { %5596 = vmatprep.subr.mxu0 %v7139_v8  ;;  %5615 = vmatprep.subr.mxu1 %v1541_v61 }
  0xd0   :  { %5597 = vmatpush3.msra.mxu0 %v7139_v8  ;;  %5616 = vmatpush3.msra.mxu1 %v1541_v61 }
  0xd1   :  { %5598 = vmatprep.subr.mxu0 %v7151_v0  ;;  %5617 = vmatprep.subr.mxu1 %v1548_v35 }
  0xd2   :  { %5599 = vmatpush3.msra.mxu0 %v7151_v0  ;;  %5618 = vmatpush3.msra.mxu1 %v1548_v35 }
  0xd3   :  { %5600 = vmatprep.mubr.f32.mxu0 %v1470_v44  ;;  %5619 = vmatprep.subr.mxu1 %v1555_v45 }
  0xd4   :  { %5630 = vmatprep.subr.mxu0 %v7027_v11  ;;  %5601 = vmatmul.mubr.f32.vlgmr.msra.gmra.mxu0 %v1480_v47  ;;  %v7423_v47 = vand.u32 4294901760, %v2026_v55 }
  0xd5   :  { %5620 = vmatpush3.msra.mxu1 %v1555_v45  ;;  %5631 = vmatpush3.msra.mxu0 %v7027_v11  ;;  %v2037_v11 = vld [vmem:[#allocation6 + $0x178] sm:$0xff] }
  0xd6   :  { %5621 = vmatprep.subr.mxu1 %v1562_v59  ;;  %5632 = vmatprep.subr.mxu0 %v7036_v12 }
  0xd7   :  { %5622 = vmatpush3.msra.mxu1 %v1562_v59  ;;  %5633 = vmatpush3.msra.mxu0 %v7036_v12  ;;  %v2036_v12 = vld [vmem:[#allocation6 + $0x170] sm:$0xff] }
  0xd8   :  { %5623 = vmatprep.subr.mxu1 %v1569_v25  ;;  %5634 = vmatprep.subr.mxu0 %v7043_v60 }
  0xd9   :  { %5624 = vmatpush3.msra.mxu1 %v1569_v25  ;;  %5635 = vmatpush3.msra.mxu0 %v7043_v60  ;;  %v7282_v60 = vand.u32 4294901760, %v2037_v11 }
  0xda   :  { %5625 = vmatprep.subr.mxu1 %v1576_v41  ;;  %5636 = vmatprep.subr.mxu0 %v7053_v52 }
  0xdb   :  { %5626 = vmatpush3.msra.mxu1 %v1576_v41  ;;  %5627 = vmatprep.mubr.f32.mxu1 %v7106_v16 }
  0xdc   :  { %5637 = vmatpush3.msra.mxu0 %v7053_v52  ;;  %5628 = vmatmul.mubr.f32.vlgmr.msra.gmra.mxu1 %v7110_v18  ;;  %v7297_v52 = vsub.f32 %v2037_v11, %v7282_v60 }
  0xdd   :  { %5638 = vmatprep.subr.mxu0 %v7068_v58  ;;  %5657 = vmatprep.subr.mxu1 %v7012_v4 }
  0xde   :  { %5639 = vmatpush3.msra.mxu0 %v7068_v58  ;;  %5658 = vmatpush3.msra.mxu1 %v7012_v4  ;;  %v2032_v58 = vld [vmem:[#allocation6 + $0x150] sm:$0xff] }
  0xdf   :  { %5640 = vmatprep.subr.mxu0 %v7089_v39  ;;  %5659 = vmatprep.subr.mxu1 %v7018_v5 }
  0xe0   :  { %5641 = vmatpush3.msra.mxu0 %v7089_v39  ;;  %5660 = vmatpush3.msra.mxu1 %v7018_v5 }
  0xe1   :  { %5642 = vmatprep.subr.mxu0 %v7104_v15  ;;  %5661 = vmatprep.subr.mxu1 %v7022_v6 }
  0xe2   :  { %5643 = vmatpush3.msra.mxu0 %v7104_v15  ;;  %5662 = vmatpush3.msra.mxu1 %v7022_v6 }
  0xe3   :  { %5644 = vmatprep.subr.mxu0 %v7120_v30  ;;  %5663 = vmatprep.subr.mxu1 %v7031_v40 }
  0xe4   :  { %5645 = vmatpush3.msra.mxu0 %v7120_v30  ;;  %5664 = vmatpush3.msra.mxu1 %v7031_v40 }
  0xe5   :  { %5646 = vmatprep.subr.mxu0 %v7136_v53  ;;  %5665 = vmatprep.subr.mxu1 %v7040_v46 }
  0xe6   :  { %5647 = vmatpush3.msra.mxu0 %v7136_v53  ;;  %5666 = vmatpush3.msra.mxu1 %v7040_v46 }
  0xe7   :  { %5648 = vmatprep.subr.mxu0 %v7154_v2  ;;  %5667 = vmatprep.subr.mxu1 %v7057_v1 }
  0xe8   :  { %5649 = vmatpush3.msra.mxu0 %v7154_v2  ;;  %5668 = vmatpush3.msra.mxu1 %v7057_v1 }
  0xe9   :  { %5650 = vmatprep.subr.mxu0 %v7166_v24  ;;  %5669 = vmatprep.subr.mxu1 %v7074_v33 }
  0xea   :  { %5651 = vmatpush3.msra.mxu0 %v7166_v24  ;;  %5670 = vmatpush3.msra.mxu1 %v7074_v33 }
  0xeb   :  { %5652 = vmatprep.subr.mxu0 %v7176_v54  ;;  %5671 = vmatprep.subr.mxu1 %v7086_v38 }
  0xec   :  { %5653 = vmatpush3.msra.mxu0 %v7176_v54  ;;  %5654 = vmatprep.mubr.f32.mxu0 %v7133_v48  ;;  %v2027_v54 = vld [vmem:[#allocation6 + $0x128] sm:$0xff] }
  0xed   :  { %5672 = vmatpush3.msra.mxu1 %v7086_v38  ;;  %5655 = vmatmul.mubr.f32.vlgmr.msra.gmra.mxu0 %v7142_v56  ;;  %v2029_v56 = vld [vmem:[#allocation6 + $0x138] sm:$0xff] }
  0xee   :  { %5673 = vmatprep.subr.mxu1 %v7101_v49  ;;  %5684 = vmatprep.subr.mxu0 %v7048_v17  ;;  %v7370_v9 = vand.u32 4294901760, %v2029_v56 }
  0xef   :  { %5674 = vmatpush3.msra.mxu1 %v7101_v49  ;;  %5685 = vmatpush3.msra.mxu0 %v7048_v17  ;;  %v2034_v17 = vld [vmem:[#allocation6 + $0x160] sm:$0xff] }
  0xf0   :  { %5675 = vmatprep.subr.mxu1 %v7126_v36  ;;  %5686 = vmatprep.subr.mxu0 %v7060_v3  ;;  %v7408_v35 = vsub.f32 %v2029_v56, %v7370_v9 }
  0xf1   :  { %5676 = vmatpush3.msra.mxu1 %v7126_v36  ;;  %5687 = vmatpush3.msra.mxu0 %v7060_v3 }
  0xf2   :  { %5677 = vmatprep.subr.mxu1 %v7139_v8  ;;  %5688 = vmatprep.subr.mxu0 %v7065_v19  ;;  %v7433_v41 = vand.u32 4294901760, %v7408_v35 }
  0xf3   :  { %5678 = vmatpush3.msra.mxu1 %v7139_v8  ;;  %5689 = vmatpush3.msra.mxu0 %v7065_v19  ;;  %v7313_v19 = vand.u32 4294901760, %v7297_v52 }
  0xf4   :  { %5679 = vmatprep.subr.mxu1 %v7151_v0  ;;  %5690 = vmatprep.subr.mxu0 %v7079_v34 }
  0xf5   :  { %5680 = vmatpush3.msra.mxu1 %v7151_v0  ;;  %5681 = vmatprep.mubr.f32.mxu1 %v1468_v14  ;;  %v2153_v30 = vsub.f32 %v7297_v52, %v7313_v19 }
  0xf6   :  { %5691 = vmatpush3.msra.mxu0 %v7079_v34  ;;  %5682 = vmatmul.mubr.f32.vlgmr.msra.gmra.mxu1 %v1478_v21 }
  0xf7   :  { %5692 = vmatprep.subr.mxu0 %v7097_v23  ;;  %5711 = vmatprep.subr.mxu1 %v7012_v4  ;;  %v2154_v50 = vand.u32 4294901760, %v2153_v30  ;;  %v2209_v30 = vsub.f32 %v7408_v35, %v7433_v41 }
  0xf8   :  { %5693 = vmatpush3.msra.mxu0 %v7097_v23  ;;  %5712 = vmatpush3.msra.mxu1 %v7012_v4  ;;  %v2035_v4 = vld [vmem:[#allocation6 + $0x168] sm:$0xff]  ;;  %v7329_v23 = vand.u32 4294901760, %v2032_v58 }
  0xf9   :  { %5694 = vmatprep.subr.mxu0 %v7117_v10  ;;  %5713 = vmatprep.subr.mxu1 %v7018_v5 }
  0xfa   :  { %5695 = vmatpush3.msra.mxu0 %v7117_v10  ;;  %5714 = vmatpush3.msra.mxu1 %v7018_v5  ;;  %v7288_v5 = vand.u32 4294901760, %v2036_v12  ;;  %v2023_v10 = vld [vmem:[#allocation2 + $0x3] sm:$0xff] }
  0xfb   :  { %5696 = vmatprep.subr.mxu0 %v7130_v43  ;;  %5715 = vmatprep.subr.mxu1 %v7022_v6  ;;  %v2039_v29 = vsel %vm47_vm1, %v2023_v10, 0 }
  0xfc   :  { %5697 = vmatpush3.msra.mxu0 %v7130_v43  ;;  %5716 = vmatpush3.msra.mxu1 %v7022_v6  ;;  %v7294_v6 = vand.u32 4294901760, %v2035_v4  ;;  %v7304_v3 = vsub.f32 %v2036_v12, %v7288_v5  ;;  %v2030_v43 = vld [vmem:[#allocation6 + $0x140] sm:$0xff]  ;;  %v7378_v24 = vand.u32 4294901760, %v2039_v29 }
  0xfd   :  { %5698 = vmatprep.subr.mxu0 %v7148_v42  ;;  %5717 = vmatprep.subr.mxu1 %v7031_v40 }
  0xfe   :  { %5699 = vmatpush3.msra.mxu0 %v7148_v42  ;;  %5718 = vmatpush3.msra.mxu1 %v7031_v40  ;;  %v2033_v40 = vld [vmem:[#allocation6 + $0x158] sm:$0xff]  ;;  %v7325_v39 = vand.u32 4294901760, %v7304_v3  ;;  %v7361_v42 = vsub.f32 %v2032_v58, %v7329_v23  ;;  %v7448_v58 = vsub.f32 %v2026_v55, %v7423_v47 }
  0xff   :  { %5700 = vmatprep.subr.mxu0 %v7161_v22  ;;  %5719 = vmatprep.subr.mxu1 %v7040_v46  ;;  %v7320_v34 = vand.u32 4294901760, %v2033_v40 }
 0x100   :  { %5701 = vmatpush3.msra.mxu0 %v7161_v22  ;;  %5720 = vmatpush3.msra.mxu1 %v7040_v46  ;;  %v7308_v46 = vand.u32 4294901760, %v2034_v17  ;;  %v2160_v53 = vsub.f32 %v7304_v3, %v7325_v39  ;;  %v2028_v22 = vld [vmem:[#allocation6 + $0x130] sm:$0xff] }
 0x101   :  { %5702 = vmatprep.subr.mxu0 %v7173_v31  ;;  %5721 = vmatprep.subr.mxu1 %v7057_v1  ;;  %v7346_v48 = vsub.f32 %v2033_v40, %v7320_v34  ;;  %v7396_v57 = vand.u32 4294901760, %v2028_v22 }
 0x102   :  { %5703 = vmatpush3.msra.mxu0 %v7173_v31  ;;  %5722 = vmatpush3.msra.mxu1 %v7057_v1  ;;  %v7316_v1 = vsub.f32 %v2035_v4, %v7294_v6  ;;  %v7332_v15 = vsub.f32 %v2034_v17, %v7308_v46  ;;  %v7389_v31 = vand.u32 4294901760, %v7361_v42 }
 0x103   :  { %5704 = vmatprep.subr.mxu0 %v7189_v32  ;;  %5723 = vmatprep.subr.mxu1 %v7074_v33  ;;  %v7373_v14 = vand.u32 4294901760, %v7346_v48  ;;  %v7426_v51 = vsub.f32 %v2028_v22, %v7396_v57 }
 0x104   :  { %5705 = vmatpush3.msra.mxu0 %v7189_v32  ;;  %5724 = vmatpush3.msra.mxu1 %v7074_v33  ;;  %v2031_v33 = vld [vmem:[#allocation6 + $0x148] sm:$0xff]  ;;  %v7339_v7 = vand.u32 4294901760, %v7316_v1  ;;  %v7358_v62 = vand.u32 4294901760, %v7332_v15  ;;  %v7405_v32 = vsub.f32 %v2039_v29, %v7378_v24  ;;  %v2188_v44 = vsub.f32 %v7361_v42, %v7389_v31 }
 0x105   :  { %5706 = vmatprep.subr.mxu0 %v7196_v63  ;;  %5725 = vmatprep.subr.mxu1 %v7086_v38  ;;  %v7343_v27 = vand.u32 4294901760, %v2031_v33  ;;  %v7445_v40 = vand.u32 4294901760, %v7426_v51  ;;  %v7468_v29 = vand.u32 4294901760, %v7448_v58 }
 0x106   :  { %5707 = vmatpush3.msra.mxu0 %v7196_v63  ;;  %5708 = vmatprep.mubr.f32.mxu0 %v7106_v16  ;;  %v2174_v28 = vsub.f32 %v7332_v15, %v7358_v62  ;;  %v2123_v25 = vand.u32 4294901760, %v7405_v32  ;;  %v2189_v4 = vand.u32 4294901760, %v2188_v44 }
 0x107   :  { %5726 = vmatpush3.msra.mxu1 %v7086_v38  ;;  %5709 = vmatmul.mubr.f32.vlgmr.msra.gmra.mxu0 %v7110_v18  ;;  %v2024_v38 = vld [vmem:[#allocation2 + $0xb] sm:$0xff]  ;;  %v7376_v21 = vsub.f32 %v2031_v33, %v7343_v27  ;;  %v2216_v56 = vsub.f32 %v7426_v51, %v7445_v40 }
 0x108   :  { %5727 = vmatprep.subr.mxu1 %v7101_v49  ;;  %5738 = vmatprep.subr.mxu0 %v7282_v60  ;;  %v2042_v2 = vsel %vm47_vm1, %v2024_v38, 0  ;;  %v2175_v63 = vand.u32 4294901760, %v2174_v28  ;;  %v2124_v10 = vsub.f32 %v7405_v32, %v2123_v25  ;;  %v2230_v28 = vsub.f32 %v7448_v58, %v7468_v29 }
 0x109   :  { %5728 = vmatpush3.msra.mxu1 %v7101_v49  ;;  %5739 = vmatpush3.msra.mxu0 %v7282_v60  ;;  %v7355_v49 = vand.u32 4294901760, %v2030_v43  ;;  %v7382_v26 = vand.u32 4294901760, %v2042_v2 }
 0x10a   :  { %5729 = vmatprep.subr.mxu1 %v7126_v36  ;;  %5740 = vmatprep.subr.mxu0 %v7288_v5 }
 0x10b   :  { %5730 = vmatpush3.msra.mxu1 %v7126_v36  ;;  %5741 = vmatpush3.msra.mxu0 %v7288_v5  ;;  %v2167_v36 = vsub.f32 %v7316_v1, %v7339_v7  ;;  %v7392_v61 = vsub.f32 %v2030_v43, %v7355_v49  ;;  %v7414_v37 = vsub.f32 %v2042_v2, %v7382_v26  ;;  %v2125_v2 = vand.u32 4294901760, %v2124_v10 }
 0x10c   :  { %5731 = vmatprep.subr.mxu1 %v7139_v8  ;;  %5742 = vmatprep.subr.mxu0 %v7294_v6 }
 0x10d   :  { %5732 = vmatpush3.msra.mxu1 %v7139_v8  ;;  %5743 = vmatpush3.msra.mxu0 %v7294_v6  ;;  %v2161_v8 = vand.u32 4294901760, %v2160_v53  ;;  %v2168_v13 = vand.u32 4294901760, %v2167_v36  ;;  %v7420_v45 = vand.u32 4294901760, %v7392_v61  ;;  %v2133_v11 = vand.u32 4294901760, %v7414_v37 }
 0x10e   :  { %5733 = vmatprep.subr.mxu1 %v7151_v0  ;;  %5744 = vmatprep.subr.mxu0 %v7308_v46 }
 0x10f   :  { %5734 = vmatpush3.msra.mxu1 %v7151_v0  ;;  %5735 = vmatprep.mubr.f32.mxu1 %v7106_v16  ;;  %v2181_v16 = vsub.f32 %v7346_v48, %v7373_v14  ;;  %v7402_v0 = vand.u32 4294901760, %v7376_v21  ;;  %v2202_v17 = vsub.f32 %v7392_v61, %v7420_v45  ;;  %v2134_v43 = vsub.f32 %v7414_v37, %v2133_v11 }
 0x110   :  { %5745 = vmatpush3.msra.mxu0 %v7308_v46  ;;  %5736 = vmatmul.mubr.f32.vlgmr.msra.gmra.mxu1 %v7110_v18  ;;  %v7411_v18 = vand.u32 4294901760, %v2027_v54 }
 0x111   :  { %5746 = vmatprep.subr.mxu0 %v7320_v34  ;;  %5765 = vmatprep.subr.mxu1 %v2154_v50  ;;  %v2182_v59 = vand.u32 4294901760, %v2181_v16  ;;  %v2195_v20 = vsub.f32 %v7376_v21, %v7402_v0  ;;  %v2203_v53 = vand.u32 4294901760, %v2202_v17  ;;  %v2135_v36 = vand.u32 4294901760, %v2134_v43  ;;  %v2681_v43 = vld [vmem:[#allocation6 + $0x180] sm:$0xff] }
 0x112   :  { %5747 = vmatpush3.msra.mxu0 %v7320_v34  ;;  %5766 = vmatpush3.msra.mxu1 %v2154_v50  ;;  %v7438_v12 = vsub.f32 %v2027_v54, %v7411_v18  ;;  %v2210_v50 = vand.u32 4294901760, %v2209_v30 }
 0x113   :  { %5748 = vmatprep.subr.mxu0 %v7329_v23  ;;  %5767 = vmatprep.subr.mxu1 %v2161_v8  ;;  %v2196_v33 = vand.u32 4294901760, %v2195_v20 }
 0x114   :  { %5749 = vmatpush3.msra.mxu0 %v7329_v23  ;;  %5768 = vmatpush3.msra.mxu1 %v2161_v8  ;;  %v7461_v38 = vand.u32 4294901760, %v7438_v12  ;;  %v2217_v8 = vand.u32 4294901760, %v2216_v56 }
 0x115   :  { %5750 = vmatprep.subr.mxu0 %v7343_v27  ;;  %5769 = vmatprep.subr.mxu1 %v2168_v13 }
 0x116   :  { %5751 = vmatpush3.msra.mxu0 %v7343_v27  ;;  %5770 = vmatpush3.msra.mxu1 %v2168_v13  ;;  %v2223_v22 = vsub.f32 %v7438_v12, %v7461_v38  ;;  %v2231_v13 = vand.u32 4294901760, %v2230_v28 }
 0x117   :  { %5752 = vmatprep.subr.mxu0 %v7355_v49  ;;  %5771 = vmatprep.subr.mxu1 %v2175_v63 }
 0x118   :  { %5753 = vmatpush3.msra.mxu0 %v7355_v49  ;;  %5772 = vmatpush3.msra.mxu1 %v2175_v63  ;;  %v2224_v54 = vand.u32 4294901760, %v2223_v22 }
 0x119   :  { %5754 = vmatprep.subr.mxu0 %v7370_v9  ;;  %5773 = vmatprep.subr.mxu1 %v2182_v59 }
 0x11a   :  { %5755 = vmatpush3.msra.mxu0 %v7370_v9  ;;  %5774 = vmatpush3.msra.mxu1 %v2182_v59 }
 0x11b   :  { %5756 = vmatprep.subr.mxu0 %v7396_v57  ;;  %5775 = vmatprep.subr.mxu1 %v2189_v4 }
 0x11c   :  { %5757 = vmatpush3.msra.mxu0 %v7396_v57  ;;  %5776 = vmatpush3.msra.mxu1 %v2189_v4 }
 0x11d   :  { %5758 = vmatprep.subr.mxu0 %v7411_v18  ;;  %5777 = vmatprep.subr.mxu1 %v2196_v33 }
 0x11e   :  { %5759 = vmatpush3.msra.mxu0 %v7411_v18  ;;  %5778 = vmatpush3.msra.mxu1 %v2196_v33 }
 0x11f   :  { %5760 = vmatprep.subr.mxu0 %v7423_v47  ;;  %5779 = vmatprep.subr.mxu1 %v2203_v53 }
 0x120   :  { %5761 = vmatpush3.msra.mxu0 %v7423_v47  ;;  %5780 = vmatpush3.msra.mxu1 %v2203_v53 }
 0x121   :  { %5762 = vmatprep.mubr.f32.mxu0 %v2125_v2  ;;  %5781 = vmatprep.subr.mxu1 %v2210_v50 }
 0x122   :  { %5792 = vmatprep.subr.mxu0 %v7297_v52  ;;  %5763 = vmatmul.mubr.f32.vlgmr.msra.gmra.mxu0 %v2135_v36  ;;  %v7695_v36 = vand.u32 4294901760, %v2681_v43 }
 0x123   :  { %5782 = vmatpush3.msra.mxu1 %v2210_v50  ;;  %5793 = vmatpush3.msra.mxu0 %v7297_v52  ;;  %v2692_v52 = vld [vmem:[#allocation6 + $0x1d8] sm:$0xff] }
 0x124   :  { %5783 = vmatprep.subr.mxu1 %v2217_v8  ;;  %5794 = vmatprep.subr.mxu0 %v7304_v3 }
 0x125   :  { %5784 = vmatpush3.msra.mxu1 %v2217_v8  ;;  %5795 = vmatpush3.msra.mxu0 %v7304_v3  ;;  %v2691_v3 = vld [vmem:[#allocation6 + $0x1d0] sm:$0xff] }
 0x126   :  { %5785 = vmatprep.subr.mxu1 %v2224_v54  ;;  %5796 = vmatprep.subr.mxu0 %v7316_v1 }
 0x127   :  { %5786 = vmatpush3.msra.mxu1 %v2224_v54  ;;  %5797 = vmatpush3.msra.mxu0 %v7316_v1  ;;  %v2689_v1 = vld [vmem:[#allocation6 + $0x1c0] sm:$0xff] }
 0x128   :  { %5787 = vmatprep.subr.mxu1 %v2231_v13  ;;  %5798 = vmatprep.subr.mxu0 %v7332_v15 }
 0x129   :  { %5788 = vmatpush3.msra.mxu1 %v2231_v13  ;;  %5789 = vmatprep.mubr.f32.mxu1 %v7378_v24 }
 0x12a   :  { %5799 = vmatpush3.msra.mxu0 %v7332_v15  ;;  %5790 = vmatmul.mubr.f32.vlgmr.msra.gmra.mxu1 %v7382_v26 }
 0x12b   :  { %5800 = vmatprep.subr.mxu0 %v7346_v48  ;;  %5819 = vmatprep.subr.mxu1 %v7282_v60 }
 0x12c   :  { %5801 = vmatpush3.msra.mxu0 %v7346_v48  ;;  %5820 = vmatpush3.msra.mxu1 %v7282_v60  ;;  %v2687_v48 = vld [vmem:[#allocation6 + $0x1b0] sm:$0xff] }
 0x12d   :  { %5802 = vmatprep.subr.mxu0 %v7361_v42  ;;  %5821 = vmatprep.subr.mxu1 %v7288_v5 }
 0x12e   :  { %5803 = vmatpush3.msra.mxu0 %v7361_v42  ;;  %5822 = vmatpush3.msra.mxu1 %v7288_v5 }
 0x12f   :  { %5804 = vmatprep.subr.mxu0 %v7376_v21  ;;  %5823 = vmatprep.subr.mxu1 %v7294_v6 }
 0x130   :  { %5805 = vmatpush3.msra.mxu0 %v7376_v21  ;;  %5824 = vmatpush3.msra.mxu1 %v7294_v6 }
 0x131   :  { %5806 = vmatprep.subr.mxu0 %v7392_v61  ;;  %5825 = vmatprep.subr.mxu1 %v7308_v46 }
 0x132   :  { %5807 = vmatpush3.msra.mxu0 %v7392_v61  ;;  %5826 = vmatpush3.msra.mxu1 %v7308_v46 }
 0x133   :  { %5808 = vmatprep.subr.mxu0 %v7408_v35  ;;  %5827 = vmatprep.subr.mxu1 %v7320_v34 }
 0x134   :  { %5809 = vmatpush3.msra.mxu0 %v7408_v35  ;;  %5828 = vmatpush3.msra.mxu1 %v7320_v34 }
 0x135   :  { %5810 = vmatprep.subr.mxu0 %v7426_v51  ;;  %5829 = vmatprep.subr.mxu1 %v7329_v23 }
 0x136   :  { %5811 = vmatpush3.msra.mxu0 %v7426_v51  ;;  %5830 = vmatpush3.msra.mxu1 %v7329_v23 }
 0x137   :  { %5812 = vmatprep.subr.mxu0 %v7438_v12  ;;  %5831 = vmatprep.subr.mxu1 %v7343_v27 }
 0x138   :  { %5813 = vmatpush3.msra.mxu0 %v7438_v12  ;;  %5832 = vmatpush3.msra.mxu1 %v7343_v27 }
 0x139   :  { %5814 = vmatprep.subr.mxu0 %v7448_v58  ;;  %5833 = vmatprep.subr.mxu1 %v7355_v49 }
 0x13a   :  { %5815 = vmatpush3.msra.mxu0 %v7448_v58  ;;  %5816 = vmatprep.mubr.f32.mxu0 %v7405_v32  ;;  %v2682_v58 = vld [vmem:[#allocation6 + $0x188] sm:$0xff] }
 0x13b   :  { %5834 = vmatpush3.msra.mxu1 %v7355_v49  ;;  %5817 = vmatmul.mubr.f32.vlgmr.msra.gmra.mxu0 %v7414_v37  ;;  %v2684_v37 = vld [vmem:[#allocation6 + $0x198] sm:$0xff] }
 0x13c   :  { %5835 = vmatprep.subr.mxu1 %v7370_v9  ;;  %5846 = vmatprep.subr.mxu0 %v7313_v19  ;;  %v7642_v20 = vand.u32 4294901760, %v2684_v37 }
 0x13d   :  { %5836 = vmatpush3.msra.mxu1 %v7370_v9  ;;  %5847 = vmatpush3.msra.mxu0 %v7313_v19  ;;  %v7554_v19 = vand.u32 4294901760, %v2692_v52 }
 0x13e   :  { %5837 = vmatprep.subr.mxu1 %v7396_v57  ;;  %5848 = vmatprep.subr.mxu0 %v7325_v39  ;;  %v7680_v53 = vsub.f32 %v2684_v37, %v7642_v20 }
 0x13f   :  { %5838 = vmatpush3.msra.mxu1 %v7396_v57  ;;  %5849 = vmatpush3.msra.mxu0 %v7325_v39  ;;  %v7569_v39 = vsub.f32 %v2692_v52, %v7554_v19 }
 0x140   :  { %5839 = vmatprep.subr.mxu1 %v7411_v18  ;;  %5850 = vmatprep.subr.mxu0 %v7339_v7  ;;  %v7705_v13 = vand.u32 4294901760, %v7680_v53 }
 0x141   :  { %5840 = vmatpush3.msra.mxu1 %v7411_v18  ;;  %5851 = vmatpush3.msra.mxu0 %v7339_v7  ;;  %v7585_v7 = vand.u32 4294901760, %v7569_v39 }
 0x142   :  { %5841 = vmatprep.subr.mxu1 %v7423_v47  ;;  %5852 = vmatprep.subr.mxu0 %v7358_v62 }
 0x143   :  { %5842 = vmatpush3.msra.mxu1 %v7423_v47  ;;  %5843 = vmatprep.mubr.f32.mxu1 %v2123_v25  ;;  %v2808_v61 = vsub.f32 %v7569_v39, %v7585_v7 }
 0x144   :  { %5853 = vmatpush3.msra.mxu0 %v7358_v62  ;;  %5844 = vmatmul.mubr.f32.vlgmr.msra.gmra.mxu1 %v2133_v11 }
 0x145   :  { %5854 = vmatprep.subr.mxu0 %v7373_v14  ;;  %5873 = vmatprep.subr.mxu1 %v7282_v60  ;;  %v2809_v59 = vand.u32 4294901760, %v2808_v61  ;;  %v2864_v61 = vsub.f32 %v7680_v53, %v7705_v13 }
 0x146   :  { %5855 = vmatpush3.msra.mxu0 %v7373_v14  ;;  %5874 = vmatpush3.msra.mxu1 %v7282_v60  ;;  %v2690_v60 = vld [vmem:[#allocation6 + $0x1c8] sm:$0xff]  ;;  %v7601_v14 = vand.u32 4294901760, %v2687_v48 }
 0x147   :  { %5856 = vmatprep.subr.mxu0 %v7389_v31  ;;  %5875 = vmatprep.subr.mxu1 %v7288_v5 }
 0x148   :  { %5857 = vmatpush3.msra.mxu0 %v7389_v31  ;;  %5876 = vmatpush3.msra.mxu1 %v7288_v5  ;;  %v7560_v5 = vand.u32 4294901760, %v2691_v3  ;;  %v2678_v31 = vld [vmem:[#allocation2 + $0x4] sm:$0xff] }
 0x149   :  { %5858 = vmatprep.subr.mxu0 %v7402_v0  ;;  %5877 = vmatprep.subr.mxu1 %v7294_v6  ;;  %v2694_v63 = vsel %vm47_vm1, %v2678_v31, 0 }
 0x14a   :  { %5859 = vmatpush3.msra.mxu0 %v7402_v0  ;;  %5878 = vmatpush3.msra.mxu1 %v7294_v6  ;;  %v7566_v6 = vand.u32 4294901760, %v2690_v60  ;;  %v7576_v15 = vsub.f32 %v2691_v3, %v7560_v5  ;;  %v2685_v0 = vld [vmem:[#allocation6 + $0x1a0] sm:$0xff]  ;;  %v7650_v12 = vand.u32 4294901760, %v2694_v63 }
 0x14b   :  { %5860 = vmatprep.subr.mxu0 %v7420_v45  ;;  %5879 = vmatprep.subr.mxu1 %v7308_v46 }
 0x14c   :  { %5861 = vmatpush3.msra.mxu0 %v7420_v45  ;;  %5880 = vmatpush3.msra.mxu1 %v7308_v46  ;;  %v2688_v46 = vld [vmem:[#allocation6 + $0x1b8] sm:$0xff]  ;;  %v7597_v42 = vand.u32 4294901760, %v7576_v15  ;;  %v7633_v45 = vsub.f32 %v2687_v48, %v7601_v14  ;;  %v7720_v48 = vsub.f32 %v2681_v43, %v7695_v36 }
 0x14d   :  { %5862 = vmatprep.subr.mxu0 %v7433_v41  ;;  %5881 = vmatprep.subr.mxu1 %v7320_v34  ;;  %v7592_v62 = vand.u32 4294901760, %v2688_v46 }
 0x14e   :  { %5863 = vmatpush3.msra.mxu0 %v7433_v41  ;;  %5882 = vmatpush3.msra.mxu1 %v7320_v34  ;;  %v7580_v34 = vand.u32 4294901760, %v2689_v1  ;;  %v2815_v35 = vsub.f32 %v7576_v15, %v7597_v42  ;;  %v2683_v41 = vld [vmem:[#allocation6 + $0x190] sm:$0xff] }
 0x14f   :  { %5864 = vmatprep.subr.mxu0 %v7445_v40  ;;  %5883 = vmatprep.subr.mxu1 %v7329_v23  ;;  %v7618_v32 = vsub.f32 %v2688_v46, %v7592_v62  ;;  %v7668_v30 = vand.u32 4294901760, %v2683_v41 }
 0x150   :  { %5865 = vmatpush3.msra.mxu0 %v7445_v40  ;;  %5884 = vmatpush3.msra.mxu1 %v7329_v23  ;;  %v7588_v23 = vsub.f32 %v2690_v60, %v7566_v6  ;;  %v7604_v21 = vsub.f32 %v2689_v1, %v7580_v34  ;;  %v7661_v40 = vand.u32 4294901760, %v7633_v45 }
 0x151   :  { %5866 = vmatprep.subr.mxu0 %v7461_v38  ;;  %5885 = vmatprep.subr.mxu1 %v7343_v27  ;;  %v7645_v25 = vand.u32 4294901760, %v7618_v32  ;;  %v7698_v22 = vsub.f32 %v2683_v41, %v7668_v30 }
 0x152   :  { %5867 = vmatpush3.msra.mxu0 %v7461_v38  ;;  %5886 = vmatpush3.msra.mxu1 %v7343_v27  ;;  %v2686_v27 = vld [vmem:[#allocation6 + $0x1a8] sm:$0xff]  ;;  %v7611_v16 = vand.u32 4294901760, %v7588_v23  ;;  %v7630_v44 = vand.u32 4294901760, %v7604_v21  ;;  %v7677_v38 = vsub.f32 %v2694_v63, %v7650_v12  ;;  %v2843_v2 = vsub.f32 %v7633_v45, %v7661_v40 }
 0x153   :  { %5868 = vmatprep.subr.mxu0 %v7468_v29  ;;  %5887 = vmatprep.subr.mxu1 %v7355_v49  ;;  %v7615_v55 = vand.u32 4294901760, %v2686_v27  ;;  %v7717_v46 = vand.u32 4294901760, %v7698_v22  ;;  %v7740_v63 = vand.u32 4294901760, %v7720_v48 }
 0x154   :  { %5869 = vmatpush3.msra.mxu0 %v7468_v29  ;;  %5870 = vmatprep.mubr.f32.mxu0 %v7378_v24  ;;  %v2829_v17 = vsub.f32 %v7604_v21, %v7630_v44  ;;  %v2778_v54 = vand.u32 4294901760, %v7677_v38  ;;  %v2844_v60 = vand.u32 4294901760, %v2843_v2 }
 0x155   :  { %5888 = vmatpush3.msra.mxu1 %v7355_v49  ;;  %5871 = vmatmul.mubr.f32.vlgmr.msra.gmra.mxu0 %v7382_v26  ;;  %v2679_v49 = vld [vmem:[#allocation2 + $0xc] sm:$0xff]  ;;  %v7648_v11 = vsub.f32 %v2686_v27, %v7615_v55  ;;  %v2871_v37 = vsub.f32 %v7698_v22, %v7717_v46 }
 0x156   :  { %5889 = vmatprep.subr.mxu1 %v7370_v9  ;;  %5900 = vmatprep.subr.mxu0 %v7554_v19  ;;  %v2697_v51 = vsel %vm47_vm1, %v2679_v49, 0  ;;  %v2830_v29 = vand.u32 4294901760, %v2829_v17  ;;  %v2779_v31 = vsub.f32 %v7677_v38, %v2778_v54  ;;  %v2885_v17 = vsub.f32 %v7720_v48, %v7740_v63 }
 0x157   :  { %5890 = vmatpush3.msra.mxu1 %v7370_v9  ;;  %5901 = vmatpush3.msra.mxu0 %v7554_v19  ;;  %v7627_v9 = vand.u32 4294901760, %v2685_v0  ;;  %v7654_v4 = vand.u32 4294901760, %v2697_v51 }
 0x158   :  { %5891 = vmatprep.subr.mxu1 %v7396_v57  ;;  %5902 = vmatprep.subr.mxu0 %v7560_v5 }
 0x159   :  { %5892 = vmatpush3.msra.mxu1 %v7396_v57  ;;  %5903 = vmatpush3.msra.mxu0 %v7560_v5  ;;  %v2822_v57 = vsub.f32 %v7588_v23, %v7611_v16  ;;  %v7664_v33 = vsub.f32 %v2685_v0, %v7627_v9  ;;  %v7686_v56 = vsub.f32 %v2697_v51, %v7654_v4  ;;  %v2780_v51 = vand.u32 4294901760, %v2779_v31 }
 0x15a   :  { %5893 = vmatprep.subr.mxu1 %v7411_v18  ;;  %5904 = vmatprep.subr.mxu0 %v7566_v6 }
 0x15b   :  { %5894 = vmatpush3.msra.mxu1 %v7411_v18  ;;  %5905 = vmatpush3.msra.mxu0 %v7566_v6  ;;  %v2816_v18 = vand.u32 4294901760, %v2815_v35  ;;  %v2823_v10 = vand.u32 4294901760, %v2822_v57  ;;  %v7692_v50 = vand.u32 4294901760, %v7664_v33  ;;  %v2788_v52 = vand.u32 4294901760, %v7686_v56 }
 0x15c   :  { %5895 = vmatprep.subr.mxu1 %v7423_v47  ;;  %5906 = vmatprep.subr.mxu0 %v7580_v34 }
 0x15d   :  { %5896 = vmatpush3.msra.mxu1 %v7423_v47  ;;  %5897 = vmatprep.mubr.f32.mxu1 %v7378_v24  ;;  %v2836_v24 = vsub.f32 %v7618_v32, %v7645_v25  ;;  %v7674_v47 = vand.u32 4294901760, %v7648_v11  ;;  %v2857_v1 = vsub.f32 %v7664_v33, %v7692_v50  ;;  %v2789_v0 = vsub.f32 %v7686_v56, %v2788_v52 }
 0x15e   :  { %5907 = vmatpush3.msra.mxu0 %v7580_v34  ;;  %5898 = vmatmul.mubr.f32.vlgmr.msra.gmra.mxu1 %v7382_v26  ;;  %v7683_v26 = vand.u32 4294901760, %v2682_v58 }
 0x15f   :  { %5908 = vmatprep.subr.mxu0 %v7592_v62  ;;  %5927 = vmatprep.subr.mxu1 %v2809_v59  ;;  %v2837_v8 = vand.u32 4294901760, %v2836_v24  ;;  %v2850_v28 = vsub.f32 %v7648_v11, %v7674_v47  ;;  %v2858_v35 = vand.u32 4294901760, %v2857_v1  ;;  %v2790_v57 = vand.u32 4294901760, %v2789_v0  ;;  %v3336_v0 = vld [vmem:[#allocation6 + $0x1e0] sm:$0xff] }
 0x160   :  { %5909 = vmatpush3.msra.mxu0 %v7592_v62  ;;  %5928 = vmatpush3.msra.mxu1 %v2809_v59  ;;  %v7710_v3 = vsub.f32 %v2682_v58, %v7683_v26  ;;  %v2865_v59 = vand.u32 4294901760, %v2864_v61 }
 0x161   :  { %5910 = vmatprep.subr.mxu0 %v7601_v14  ;;  %5929 = vmatprep.subr.mxu1 %v2816_v18  ;;  %v2851_v27 = vand.u32 4294901760, %v2850_v28 }
 0x162   :  { %5911 = vmatpush3.msra.mxu0 %v7601_v14  ;;  %5930 = vmatpush3.msra.mxu1 %v2816_v18  ;;  %v7733_v49 = vand.u32 4294901760, %v7710_v3  ;;  %v2872_v18 = vand.u32 4294901760, %v2871_v37 }
 0x163   :  { %5912 = vmatprep.subr.mxu0 %v7615_v55  ;;  %5931 = vmatprep.subr.mxu1 %v2823_v10 }
 0x164   :  { %5913 = vmatpush3.msra.mxu0 %v7615_v55  ;;  %5932 = vmatpush3.msra.mxu1 %v2823_v10  ;;  %v2878_v41 = vsub.f32 %v7710_v3, %v7733_v49  ;;  %v2886_v10 = vand.u32 4294901760, %v2885_v17 }
 0x165   :  { %5914 = vmatprep.subr.mxu0 %v7627_v9  ;;  %5933 = vmatprep.subr.mxu1 %v2830_v29 }
 0x166   :  { %5915 = vmatpush3.msra.mxu0 %v7627_v9  ;;  %5934 = vmatpush3.msra.mxu1 %v2830_v29  ;;  %v2879_v58 = vand.u32 4294901760, %v2878_v41 }
 0x167   :  { %5916 = vmatprep.subr.mxu0 %v7642_v20  ;;  %5935 = vmatprep.subr.mxu1 %v2837_v8 }
 0x168   :  { %5917 = vmatpush3.msra.mxu0 %v7642_v20  ;;  %5936 = vmatpush3.msra.mxu1 %v2837_v8 }
 0x169   :  { %5918 = vmatprep.subr.mxu0 %v7668_v30  ;;  %5937 = vmatprep.subr.mxu1 %v2844_v60 }
 0x16a   :  { %5919 = vmatpush3.msra.mxu0 %v7668_v30  ;;  %5938 = vmatpush3.msra.mxu1 %v2844_v60 }
 0x16b   :  { %5920 = vmatprep.subr.mxu0 %v7683_v26  ;;  %5939 = vmatprep.subr.mxu1 %v2851_v27 }
 0x16c   :  { %5921 = vmatpush3.msra.mxu0 %v7683_v26  ;;  %5940 = vmatpush3.msra.mxu1 %v2851_v27 }
 0x16d   :  { %5922 = vmatprep.subr.mxu0 %v7695_v36  ;;  %5941 = vmatprep.subr.mxu1 %v2858_v35 }
 0x16e   :  { %5923 = vmatpush3.msra.mxu0 %v7695_v36  ;;  %5942 = vmatpush3.msra.mxu1 %v2858_v35 }
 0x16f   :  { %5924 = vmatprep.mubr.f32.mxu0 %v2780_v51  ;;  %5943 = vmatprep.subr.mxu1 %v2865_v59 }
 0x170   :  { %5954 = vmatprep.subr.mxu0 %v7569_v39  ;;  %5925 = vmatmul.mubr.f32.vlgmr.msra.gmra.mxu0 %v2790_v57  ;;  %v7967_v57 = vand.u32 4294901760, %v3336_v0 }
 0x171   :  { %5944 = vmatpush3.msra.mxu1 %v2865_v59  ;;  %5955 = vmatpush3.msra.mxu0 %v7569_v39  ;;  %v3347_v39 = vld [vmem:[#allocation6 + $0x238] sm:$0xff] }
 0x172   :  { %5945 = vmatprep.subr.mxu1 %v2872_v18  ;;  %5956 = vmatprep.subr.mxu0 %v7576_v15 }
 0x173   :  { %5946 = vmatpush3.msra.mxu1 %v2872_v18  ;;  %5957 = vmatpush3.msra.mxu0 %v7576_v15  ;;  %v3346_v15 = vld [vmem:[#allocation6 + $0x230] sm:$0xff] }
 0x174   :  { %5947 = vmatprep.subr.mxu1 %v2879_v58  ;;  %5958 = vmatprep.subr.mxu0 %v7588_v23 }
 0x175   :  { %5948 = vmatpush3.msra.mxu1 %v2879_v58  ;;  %5959 = vmatpush3.msra.mxu0 %v7588_v23  ;;  %v3344_v23 = vld [vmem:[#allocation6 + $0x220] sm:$0xff] }
 0x176   :  { %5949 = vmatprep.subr.mxu1 %v2886_v10  ;;  %5960 = vmatprep.subr.mxu0 %v7604_v21 }
 0x177   :  { %5950 = vmatpush3.msra.mxu1 %v2886_v10  ;;  %5951 = vmatprep.mubr.f32.mxu1 %v7650_v12 }
 0x178   :  { %5961 = vmatpush3.msra.mxu0 %v7604_v21  ;;  %5952 = vmatmul.mubr.f32.vlgmr.msra.gmra.mxu1 %v7654_v4 }
 0x179   :  { %5962 = vmatprep.subr.mxu0 %v7618_v32  ;;  %5981 = vmatprep.subr.mxu1 %v7554_v19 }
 0x17a   :  { %5963 = vmatpush3.msra.mxu0 %v7618_v32  ;;  %5982 = vmatpush3.msra.mxu1 %v7554_v19  ;;  %v3342_v32 = vld [vmem:[#allocation6 + $0x210] sm:$0xff] }
 0x17b   :  { %5964 = vmatprep.subr.mxu0 %v7633_v45  ;;  %5983 = vmatprep.subr.mxu1 %v7560_v5 }
 0x17c   :  { %5965 = vmatpush3.msra.mxu0 %v7633_v45  ;;  %5984 = vmatpush3.msra.mxu1 %v7560_v5 }
 0x17d   :  { %5966 = vmatprep.subr.mxu0 %v7648_v11  ;;  %5985 = vmatprep.subr.mxu1 %v7566_v6 }
 0x17e   :  { %5967 = vmatpush3.msra.mxu0 %v7648_v11  ;;  %5986 = vmatpush3.msra.mxu1 %v7566_v6 }
 0x17f   :  { %5968 = vmatprep.subr.mxu0 %v7664_v33  ;;  %5987 = vmatprep.subr.mxu1 %v7580_v34 }
 0x180   :  { %5969 = vmatpush3.msra.mxu0 %v7664_v33  ;;  %5988 = vmatpush3.msra.mxu1 %v7580_v34 }
 0x181   :  { %5970 = vmatprep.subr.mxu0 %v7680_v53  ;;  %5989 = vmatprep.subr.mxu1 %v7592_v62 }
 0x182   :  { %5971 = vmatpush3.msra.mxu0 %v7680_v53  ;;  %5990 = vmatpush3.msra.mxu1 %v7592_v62 }
 0x183   :  { %5972 = vmatprep.subr.mxu0 %v7698_v22  ;;  %5991 = vmatprep.subr.mxu1 %v7601_v14 }
 0x184   :  { %5973 = vmatpush3.msra.mxu0 %v7698_v22  ;;  %5992 = vmatpush3.msra.mxu1 %v7601_v14 }
 0x185   :  { %5974 = vmatprep.subr.mxu0 %v7710_v3  ;;  %5993 = vmatprep.subr.mxu1 %v7615_v55 }
 0x186   :  { %5975 = vmatpush3.msra.mxu0 %v7710_v3  ;;  %5994 = vmatpush3.msra.mxu1 %v7615_v55 }
 0x187   :  { %5976 = vmatprep.subr.mxu0 %v7720_v48  ;;  %5995 = vmatprep.subr.mxu1 %v7627_v9 }
 0x188   :  { %5977 = vmatpush3.msra.mxu0 %v7720_v48  ;;  %5978 = vmatprep.mubr.f32.mxu0 %v7677_v38  ;;  %v3337_v48 = vld [vmem:[#allocation6 + $0x1e8] sm:$0xff] }
 0x189   :  { %5996 = vmatpush3.msra.mxu1 %v7627_v9  ;;  %5979 = vmatmul.mubr.f32.vlgmr.msra.gmra.mxu0 %v7686_v56  ;;  %v3339_v56 = vld [vmem:[#allocation6 + $0x1f8] sm:$0xff] }
 0x18a   :  { %5997 = vmatprep.subr.mxu1 %v7642_v20  ;;  %6008 = vmatprep.subr.mxu0 %v7585_v7  ;;  %v7914_v28 = vand.u32 4294901760, %v3339_v56 }
 0x18b   :  { %5998 = vmatpush3.msra.mxu1 %v7642_v20  ;;  %6009 = vmatpush3.msra.mxu0 %v7585_v7  ;;  %v7826_v7 = vand.u32 4294901760, %v3347_v39 }
 0x18c   :  { %5999 = vmatprep.subr.mxu1 %v7668_v30  ;;  %6010 = vmatprep.subr.mxu0 %v7597_v42  ;;  %v7952_v35 = vsub.f32 %v3339_v56, %v7914_v28 }
 0x18d   :  { %6000 = vmatpush3.msra.mxu1 %v7668_v30  ;;  %6011 = vmatpush3.msra.mxu0 %v7597_v42  ;;  %v7841_v42 = vsub.f32 %v3347_v39, %v7826_v7 }
 0x18e   :  { %6001 = vmatprep.subr.mxu1 %v7683_v26  ;;  %6012 = vmatprep.subr.mxu0 %v7611_v16  ;;  %v7977_v10 = vand.u32 4294901760, %v7952_v35 }
 0x18f   :  { %6002 = vmatpush3.msra.mxu1 %v7683_v26  ;;  %6013 = vmatpush3.msra.mxu0 %v7611_v16  ;;  %v7857_v16 = vand.u32 4294901760, %v7841_v42 }
 0x190   :  { %6003 = vmatprep.subr.mxu1 %v7695_v36  ;;  %6014 = vmatprep.subr.mxu0 %v7630_v44 }
 0x191   :  { %6004 = vmatpush3.msra.mxu1 %v7695_v36  ;;  %6005 = vmatprep.mubr.f32.mxu1 %v2778_v54  ;;  %v3463_v33 = vsub.f32 %v7841_v42, %v7857_v16 }
 0x192   :  { %6015 = vmatpush3.msra.mxu0 %v7630_v44  ;;  %6006 = vmatmul.mubr.f32.vlgmr.msra.gmra.mxu1 %v2788_v52 }
 0x193   :  { %6016 = vmatprep.subr.mxu0 %v7645_v25  ;;  %6035 = vmatprep.subr.mxu1 %v7554_v19  ;;  %v3464_v8 = vand.u32 4294901760, %v3463_v33  ;;  %v3519_v33 = vsub.f32 %v7952_v35, %v7977_v10 }
 0x194   :  { %6017 = vmatpush3.msra.mxu0 %v7645_v25  ;;  %6036 = vmatpush3.msra.mxu1 %v7554_v19  ;;  %v3345_v19 = vld [vmem:[#allocation6 + $0x228] sm:$0xff]  ;;  %v7873_v25 = vand.u32 4294901760, %v3342_v32 }
 0x195   :  { %6018 = vmatprep.subr.mxu0 %v7661_v40  ;;  %6037 = vmatprep.subr.mxu1 %v7560_v5 }
 0x196   :  { %6019 = vmatpush3.msra.mxu0 %v7661_v40  ;;  %6038 = vmatpush3.msra.mxu1 %v7560_v5  ;;  %v7832_v5 = vand.u32 4294901760, %v3346_v15  ;;  %v3333_v40 = vld [vmem:[#allocation2 + $0x5] sm:$0xff] }
 0x197   :  { %6020 = vmatprep.subr.mxu0 %v7674_v47  ;;  %6039 = vmatprep.subr.mxu1 %v7566_v6  ;;  %v3349_v29 = vsel %vm47_vm1, %v3333_v40, 0 }
 0x198   :  { %6021 = vmatpush3.msra.mxu0 %v7674_v47  ;;  %6040 = vmatpush3.msra.mxu1 %v7566_v6  ;;  %v7838_v6 = vand.u32 4294901760, %v3345_v19  ;;  %v7848_v21 = vsub.f32 %v3346_v15, %v7832_v5  ;;  %v3340_v47 = vld [vmem:[#allocation6 + $0x200] sm:$0xff]  ;;  %v7922_v3 = vand.u32 4294901760, %v3349_v29 }
 0x199   :  { %6022 = vmatprep.subr.mxu0 %v7692_v50  ;;  %6041 = vmatprep.subr.mxu1 %v7580_v34 }
 0x19a   :  { %6023 = vmatpush3.msra.mxu0 %v7692_v50  ;;  %6042 = vmatpush3.msra.mxu1 %v7580_v34  ;;  %v3343_v34 = vld [vmem:[#allocation6 + $0x218] sm:$0xff]  ;;  %v7869_v45 = vand.u32 4294901760, %v7848_v21  ;;  %v7905_v50 = vsub.f32 %v3342_v32, %v7873_v25  ;;  %v7992_v32 = vsub.f32 %v3336_v0, %v7967_v57 }
 0x19b   :  { %6024 = vmatprep.subr.mxu0 %v7705_v13  ;;  %6043 = vmatprep.subr.mxu1 %v7592_v62  ;;  %v7864_v44 = vand.u32 4294901760, %v3343_v34 }
 0x19c   :  { %6025 = vmatpush3.msra.mxu0 %v7705_v13  ;;  %6044 = vmatpush3.msra.mxu1 %v7592_v62  ;;  %v7852_v62 = vand.u32 4294901760, %v3344_v23  ;;  %v3470_v53 = vsub.f32 %v7848_v21, %v7869_v45  ;;  %v3338_v13 = vld [vmem:[#allocation6 + $0x1f0] sm:$0xff] }
 0x19d   :  { %6026 = vmatprep.subr.mxu0 %v7717_v46  ;;  %6045 = vmatprep.subr.mxu1 %v7601_v14  ;;  %v7890_v38 = vsub.f32 %v3343_v34, %v7864_v44  ;;  %v7940_v61 = vand.u32 4294901760, %v3338_v13 }
 0x19e   :  { %6027 = vmatpush3.msra.mxu0 %v7717_v46  ;;  %6046 = vmatpush3.msra.mxu1 %v7601_v14  ;;  %v7860_v14 = vsub.f32 %v3345_v19, %v7838_v6  ;;  %v7876_v11 = vsub.f32 %v3344_v23, %v7852_v62  ;;  %v7933_v46 = vand.u32 4294901760, %v7905_v50 }
 0x19f   :  { %6028 = vmatprep.subr.mxu0 %v7733_v49  ;;  %6047 = vmatprep.subr.mxu1 %v7615_v55  ;;  %v7917_v54 = vand.u32 4294901760, %v7890_v38  ;;  %v7970_v41 = vsub.f32 %v3338_v13, %v7940_v61 }
 0x1a0   :  { %6029 = vmatpush3.msra.mxu0 %v7733_v49  ;;  %6048 = vmatpush3.msra.mxu1 %v7615_v55  ;;  %v3341_v55 = vld [vmem:[#allocation6 + $0x208] sm:$0xff]  ;;  %v7883_v24 = vand.u32 4294901760, %v7860_v14  ;;  %v7902_v2 = vand.u32 4294901760, %v7876_v11  ;;  %v7949_v49 = vsub.f32 %v3349_v29, %v7922_v3  ;;  %v3498_v51 = vsub.f32 %v7905_v50, %v7933_v46 }
 0x1a1   :  { %6030 = vmatprep.subr.mxu0 %v7740_v63  ;;  %6049 = vmatprep.subr.mxu1 %v7627_v9  ;;  %v7887_v43 = vand.u32 4294901760, %v3341_v55  ;;  %v7989_v34 = vand.u32 4294901760, %v7970_v41  ;;  %v8012_v29 = vand.u32 4294901760, %v7992_v32 }
 0x1a2   :  { %6031 = vmatpush3.msra.mxu0 %v7740_v63  ;;  %6032 = vmatprep.mubr.f32.mxu0 %v7650_v12  ;;  %v3484_v1 = vsub.f32 %v7876_v11, %v7902_v2  ;;  %v3433_v58 = vand.u32 4294901760, %v7949_v49  ;;  %v3499_v19 = vand.u32 4294901760, %v3498_v51 }
 0x1a3   :  { %6050 = vmatpush3.msra.mxu1 %v7627_v9  ;;  %6033 = vmatmul.mubr.f32.vlgmr.msra.gmra.mxu0 %v7654_v4  ;;  %v3334_v9 = vld [vmem:[#allocation2 + $0xd] sm:$0xff]  ;;  %v7920_v52 = vsub.f32 %v3341_v55, %v7887_v43  ;;  %v3526_v56 = vsub.f32 %v7970_v41, %v7989_v34 }
 0x1a4   :  { %6051 = vmatprep.subr.mxu1 %v7642_v20  ;;  %6062 = vmatprep.subr.mxu0 %v7826_v7  ;;  %v3352_v22 = vsel %vm47_vm1, %v3334_v9, 0  ;;  %v3485_v63 = vand.u32 4294901760, %v3484_v1  ;;  %v3434_v40 = vsub.f32 %v7949_v49, %v3433_v58  ;;  %v3540_v1 = vsub.f32 %v7992_v32, %v8012_v29 }
 0x1a5   :  { %6052 = vmatpush3.msra.mxu1 %v7642_v20  ;;  %6063 = vmatpush3.msra.mxu0 %v7826_v7  ;;  %v7899_v20 = vand.u32 4294901760, %v3340_v47  ;;  %v7926_v60 = vand.u32 4294901760, %v3352_v22 }
 0x1a6   :  { %6053 = vmatprep.subr.mxu1 %v7668_v30  ;;  %6064 = vmatprep.subr.mxu0 %v7832_v5 }
 0x1a7   :  { %6054 = vmatpush3.msra.mxu1 %v7668_v30  ;;  %6065 = vmatpush3.msra.mxu0 %v7832_v5  ;;  %v3477_v30 = vsub.f32 %v7860_v14, %v7883_v24  ;;  %v7936_v27 = vsub.f32 %v3340_v47, %v7899_v20  ;;  %v7958_v37 = vsub.f32 %v3352_v22, %v7926_v60  ;;  %v3435_v22 = vand.u32 4294901760, %v3434_v40 }
 0x1a8   :  { %6055 = vmatprep.subr.mxu1 %v7683_v26  ;;  %6066 = vmatprep.subr.mxu0 %v7838_v6 }
 0x1a9   :  { %6056 = vmatpush3.msra.mxu1 %v7683_v26  ;;  %6067 = vmatpush3.msra.mxu0 %v7838_v6  ;;  %v3471_v26 = vand.u32 4294901760, %v3470_v53  ;;  %v3478_v31 = vand.u32 4294901760, %v3477_v30  ;;  %v7964_v59 = vand.u32 4294901760, %v7936_v27  ;;  %v3443_v39 = vand.u32 4294901760, %v7958_v37 }
 0x1aa   :  { %6057 = vmatprep.subr.mxu1 %v7695_v36  ;;  %6068 = vmatprep.subr.mxu0 %v7852_v62 }
 0x1ab   :  { %6058 = vmatpush3.msra.mxu1 %v7695_v36  ;;  %6059 = vmatprep.mubr.f32.mxu1 %v7650_v12  ;;  %v3491_v12 = vsub.f32 %v7890_v38, %v7917_v54  ;;  %v7946_v36 = vand.u32 4294901760, %v7920_v52  ;;  %v3512_v23 = vsub.f32 %v7936_v27, %v7964_v59  ;;  %v3444_v47 = vsub.f32 %v7958_v37, %v3443_v39 }
 0x1ac   :  { %6069 = vmatpush3.msra.mxu0 %v7852_v62  ;;  %6060 = vmatmul.mubr.f32.vlgmr.msra.gmra.mxu1 %v7654_v4  ;;  %v7955_v4 = vand.u32 4294901760, %v3337_v48 }
 0x1ad   :  { %6070 = vmatprep.subr.mxu0 %v7864_v44  ;;  %6089 = vmatprep.subr.mxu1 %v3464_v8  ;;  %v3492_v18 = vand.u32 4294901760, %v3491_v12  ;;  %v3505_v17 = vsub.f32 %v7920_v52, %v7946_v36  ;;  %v3513_v53 = vand.u32 4294901760, %v3512_v23  ;;  %v3445_v30 = vand.u32 4294901760, %v3444_v47  ;;  %v3991_v47 = vld [vmem:[#allocation6 + $0x240] sm:$0xff] }
 0x1ae   :  { %6071 = vmatpush3.msra.mxu0 %v7864_v44  ;;  %6090 = vmatpush3.msra.mxu1 %v3464_v8  ;;  %v7982_v15 = vsub.f32 %v3337_v48, %v7955_v4  ;;  %v3520_v8 = vand.u32 4294901760, %v3519_v33 }
 0x1af   :  { %6072 = vmatprep.subr.mxu0 %v7873_v25  ;;  %6091 = vmatprep.subr.mxu1 %v3471_v26  ;;  %v3506_v55 = vand.u32 4294901760, %v3505_v17 }
 0x1b0   :  { %6073 = vmatpush3.msra.mxu0 %v7873_v25  ;;  %6092 = vmatpush3.msra.mxu1 %v3471_v26  ;;  %v8005_v9 = vand.u32 4294901760, %v7982_v15  ;;  %v3527_v26 = vand.u32 4294901760, %v3526_v56 }
 0x1b1   :  { %6074 = vmatprep.subr.mxu0 %v7887_v43  ;;  %6093 = vmatprep.subr.mxu1 %v3478_v31 }
 0x1b2   :  { %6075 = vmatpush3.msra.mxu0 %v7887_v43  ;;  %6094 = vmatpush3.msra.mxu1 %v3478_v31  ;;  %v3533_v13 = vsub.f32 %v7982_v15, %v8005_v9  ;;  %v3541_v31 = vand.u32 4294901760, %v3540_v1 }
 0x1b3   :  { %6076 = vmatprep.subr.mxu0 %v7899_v20  ;;  %6095 = vmatprep.subr.mxu1 %v3485_v63 }
 0x1b4   :  { %6077 = vmatpush3.msra.mxu0 %v7899_v20  ;;  %6096 = vmatpush3.msra.mxu1 %v3485_v63  ;;  %v3534_v48 = vand.u32 4294901760, %v3533_v13 }
 0x1b5   :  { %6078 = vmatprep.subr.mxu0 %v7914_v28  ;;  %6097 = vmatprep.subr.mxu1 %v3492_v18 }
 0x1b6   :  { %6079 = vmatpush3.msra.mxu0 %v7914_v28  ;;  %6098 = vmatpush3.msra.mxu1 %v3492_v18 }
 0x1b7   :  { %6080 = vmatprep.subr.mxu0 %v7940_v61  ;;  %6099 = vmatprep.subr.mxu1 %v3499_v19 }
 0x1b8   :  { %6081 = vmatpush3.msra.mxu0 %v7940_v61  ;;  %6100 = vmatpush3.msra.mxu1 %v3499_v19 }
 0x1b9   :  { %6082 = vmatprep.subr.mxu0 %v7955_v4  ;;  %6101 = vmatprep.subr.mxu1 %v3506_v55 }
 0x1ba   :  { %6083 = vmatpush3.msra.mxu0 %v7955_v4  ;;  %6102 = vmatpush3.msra.mxu1 %v3506_v55 }
 0x1bb   :  { %6084 = vmatprep.subr.mxu0 %v7967_v57  ;;  %6103 = vmatprep.subr.mxu1 %v3513_v53 }
 0x1bc   :  { %6085 = vmatpush3.msra.mxu0 %v7967_v57  ;;  %6104 = vmatpush3.msra.mxu1 %v3513_v53 }
 0x1bd   :  { %6086 = vmatprep.mubr.f32.mxu0 %v3435_v22  ;;  %6105 = vmatprep.subr.mxu1 %v3520_v8 }
 0x1be   :  { %6116 = vmatprep.subr.mxu0 %v7841_v42  ;;  %6087 = vmatmul.mubr.f32.vlgmr.msra.gmra.mxu0 %v3445_v30  ;;  %v8239_v30 = vand.u32 4294901760, %v3991_v47 }
 0x1bf   :  { %6106 = vmatpush3.msra.mxu1 %v3520_v8  ;;  %6117 = vmatpush3.msra.mxu0 %v7841_v42  ;;  %v4002_v42 = vld [vmem:[#allocation6 + $0x298] sm:$0xff] }
 0x1c0   :  { %6107 = vmatprep.subr.mxu1 %v3527_v26  ;;  %6118 = vmatprep.subr.mxu0 %v7848_v21 }
 0x1c1   :  { %6108 = vmatpush3.msra.mxu1 %v3527_v26  ;;  %6119 = vmatpush3.msra.mxu0 %v7848_v21  ;;  %v4001_v21 = vld [vmem:[#allocation6 + $0x290] sm:$0xff] }
 0x1c2   :  { %6109 = vmatprep.subr.mxu1 %v3534_v48  ;;  %6120 = vmatprep.subr.mxu0 %v7860_v14 }
 0x1c3   :  { %6110 = vmatpush3.msra.mxu1 %v3534_v48  ;;  %6121 = vmatpush3.msra.mxu0 %v7860_v14  ;;  %v3999_v14 = vld [vmem:[#allocation6 + $0x280] sm:$0xff] }
 0x1c4   :  { %6111 = vmatprep.subr.mxu1 %v3541_v31  ;;  %6122 = vmatprep.subr.mxu0 %v7876_v11 }
 0x1c5   :  { %6112 = vmatpush3.msra.mxu1 %v3541_v31  ;;  %6113 = vmatprep.mubr.f32.mxu1 %v7922_v3 }
 0x1c6   :  { %6123 = vmatpush3.msra.mxu0 %v7876_v11  ;;  %6114 = vmatmul.mubr.f32.vlgmr.msra.gmra.mxu1 %v7926_v60 }
 0x1c7   :  { %6124 = vmatprep.subr.mxu0 %v7890_v38  ;;  %6143 = vmatprep.subr.mxu1 %v7826_v7 }
 0x1c8   :  { %6125 = vmatpush3.msra.mxu0 %v7890_v38  ;;  %6144 = vmatpush3.msra.mxu1 %v7826_v7  ;;  %v3997_v38 = vld [vmem:[#allocation6 + $0x270] sm:$0xff] }
 0x1c9   :  { %6126 = vmatprep.subr.mxu0 %v7905_v50  ;;  %6145 = vmatprep.subr.mxu1 %v7832_v5 }
 0x1ca   :  { %6127 = vmatpush3.msra.mxu0 %v7905_v50  ;;  %6146 = vmatpush3.msra.mxu1 %v7832_v5 }
 0x1cb   :  { %6128 = vmatprep.subr.mxu0 %v7920_v52  ;;  %6147 = vmatprep.subr.mxu1 %v7838_v6 }
 0x1cc   :  { %6129 = vmatpush3.msra.mxu0 %v7920_v52  ;;  %6148 = vmatpush3.msra.mxu1 %v7838_v6 }
 0x1cd   :  { %6130 = vmatprep.subr.mxu0 %v7936_v27  ;;  %6149 = vmatprep.subr.mxu1 %v7852_v62 }
 0x1ce   :  { %6131 = vmatpush3.msra.mxu0 %v7936_v27  ;;  %6150 = vmatpush3.msra.mxu1 %v7852_v62 }
 0x1cf   :  { %6132 = vmatprep.subr.mxu0 %v7952_v35  ;;  %6151 = vmatprep.subr.mxu1 %v7864_v44 }
 0x1d0   :  { %6133 = vmatpush3.msra.mxu0 %v7952_v35  ;;  %6152 = vmatpush3.msra.mxu1 %v7864_v44 }
 0x1d1   :  { %6134 = vmatprep.subr.mxu0 %v7970_v41  ;;  %6153 = vmatprep.subr.mxu1 %v7873_v25 }
 0x1d2   :  { %6135 = vmatpush3.msra.mxu0 %v7970_v41  ;;  %6154 = vmatpush3.msra.mxu1 %v7873_v25 }
 0x1d3   :  { %6136 = vmatprep.subr.mxu0 %v7982_v15  ;;  %6155 = vmatprep.subr.mxu1 %v7887_v43 }
 0x1d4   :  { %6137 = vmatpush3.msra.mxu0 %v7982_v15  ;;  %6156 = vmatpush3.msra.mxu1 %v7887_v43 }
 0x1d5   :  { %6138 = vmatprep.subr.mxu0 %v7992_v32  ;;  %6157 = vmatprep.subr.mxu1 %v7899_v20 }
 0x1d6   :  { %6139 = vmatpush3.msra.mxu0 %v7992_v32  ;;  %6140 = vmatprep.mubr.f32.mxu0 %v7949_v49  ;;  %v3992_v32 = vld [vmem:[#allocation6 + $0x248] sm:$0xff] }
 0x1d7   :  { %6158 = vmatpush3.msra.mxu1 %v7899_v20  ;;  %6141 = vmatmul.mubr.f32.vlgmr.msra.gmra.mxu0 %v7958_v37  ;;  %v3994_v37 = vld [vmem:[#allocation6 + $0x258] sm:$0xff] }
 0x1d8   :  { %6159 = vmatprep.subr.mxu1 %v7914_v28  ;;  %6170 = vmatprep.subr.mxu0 %v7857_v16  ;;  %v8186_v17 = vand.u32 4294901760, %v3994_v37 }
 0x1d9   :  { %6160 = vmatpush3.msra.mxu1 %v7914_v28  ;;  %6171 = vmatpush3.msra.mxu0 %v7857_v16  ;;  %v8098_v16 = vand.u32 4294901760, %v4002_v42 }
 0x1da   :  { %6161 = vmatprep.subr.mxu1 %v7940_v61  ;;  %6172 = vmatprep.subr.mxu0 %v7869_v45  ;;  %v8224_v53 = vsub.f32 %v3994_v37, %v8186_v17 }
 0x1db   :  { %6162 = vmatpush3.msra.mxu1 %v7940_v61  ;;  %6173 = vmatpush3.msra.mxu0 %v7869_v45  ;;  %v8113_v45 = vsub.f32 %v4002_v42, %v8098_v16 }
 0x1dc   :  { %6163 = vmatprep.subr.mxu1 %v7955_v4  ;;  %6174 = vmatprep.subr.mxu0 %v7883_v24  ;;  %v8249_v31 = vand.u32 4294901760, %v8224_v53 }
 0x1dd   :  { %6164 = vmatpush3.msra.mxu1 %v7955_v4  ;;  %6175 = vmatpush3.msra.mxu0 %v7883_v24  ;;  %v8129_v24 = vand.u32 4294901760, %v8113_v45 }
 0x1de   :  { %6165 = vmatprep.subr.mxu1 %v7967_v57  ;;  %6176 = vmatprep.subr.mxu0 %v7902_v2 }
 0x1df   :  { %6166 = vmatpush3.msra.mxu1 %v7967_v57  ;;  %6167 = vmatprep.mubr.f32.mxu1 %v3433_v58  ;;  %v4118_v27 = vsub.f32 %v8113_v45, %v8129_v24 }
 0x1e0   :  { %6177 = vmatpush3.msra.mxu0 %v7902_v2  ;;  %6168 = vmatmul.mubr.f32.vlgmr.msra.gmra.mxu1 %v3443_v39 }
 0x1e1   :  { %6178 = vmatprep.subr.mxu0 %v7917_v54  ;;  %6197 = vmatprep.subr.mxu1 %v7826_v7  ;;  %v4119_v18 = vand.u32 4294901760, %v4118_v27  ;;  %v4174_v27 = vsub.f32 %v8224_v53, %v8249_v31 }
 0x1e2   :  { %6179 = vmatpush3.msra.mxu0 %v7917_v54  ;;  %6198 = vmatpush3.msra.mxu1 %v7826_v7  ;;  %v4000_v7 = vld [vmem:[#allocation6 + $0x288] sm:$0xff]  ;;  %v8145_v54 = vand.u32 4294901760, %v3997_v38 }
 0x1e3   :  { %6180 = vmatprep.subr.mxu0 %v7933_v46  ;;  %6199 = vmatprep.subr.mxu1 %v7832_v5 }
 0x1e4   :  { %6181 = vmatpush3.msra.mxu0 %v7933_v46  ;;  %6200 = vmatpush3.msra.mxu1 %v7832_v5  ;;  %v8104_v5 = vand.u32 4294901760, %v4001_v21  ;;  %v3988_v46 = vld [vmem:[#allocation2 + $0x6] sm:$0xff] }
 0x1e5   :  { %6182 = vmatprep.subr.mxu0 %v7946_v36  ;;  %6201 = vmatprep.subr.mxu1 %v7838_v6  ;;  %v4004_v63 = vsel %vm47_vm1, %v3988_v46, 0 }
 0x1e6   :  { %6183 = vmatpush3.msra.mxu0 %v7946_v36  ;;  %6202 = vmatpush3.msra.mxu1 %v7838_v6  ;;  %v8110_v6 = vand.u32 4294901760, %v4000_v7  ;;  %v8120_v11 = vsub.f32 %v4001_v21, %v8104_v5  ;;  %v3995_v36 = vld [vmem:[#allocation6 + $0x260] sm:$0xff]  ;;  %v8194_v15 = vand.u32 4294901760, %v4004_v63 }
 0x1e7   :  { %6184 = vmatprep.subr.mxu0 %v7964_v59  ;;  %6203 = vmatprep.subr.mxu1 %v7852_v62 }
 0x1e8   :  { %6185 = vmatpush3.msra.mxu0 %v7964_v59  ;;  %6204 = vmatpush3.msra.mxu1 %v7852_v62  ;;  %v3998_v62 = vld [vmem:[#allocation6 + $0x278] sm:$0xff]  ;;  %v8141_v50 = vand.u32 4294901760, %v8120_v11  ;;  %v8177_v59 = vsub.f32 %v3997_v38, %v8145_v54  ;;  %v8264_v38 = vsub.f32 %v3991_v47, %v8239_v30 }
 0x1e9   :  { %6186 = vmatprep.subr.mxu0 %v7977_v10  ;;  %6205 = vmatprep.subr.mxu1 %v7864_v44  ;;  %v8136_v2 = vand.u32 4294901760, %v3998_v62 }
 0x1ea   :  { %6187 = vmatpush3.msra.mxu0 %v7977_v10  ;;  %6206 = vmatpush3.msra.mxu1 %v7864_v44  ;;  %v8124_v44 = vand.u32 4294901760, %v3999_v14  ;;  %v4125_v35 = vsub.f32 %v8120_v11, %v8141_v50  ;;  %v3993_v10 = vld [vmem:[#allocation6 + $0x250] sm:$0xff] }
 0x1eb   :  { %6188 = vmatprep.subr.mxu0 %v7989_v34  ;;  %6207 = vmatprep.subr.mxu1 %v7873_v25  ;;  %v8162_v49 = vsub.f32 %v3998_v62, %v8136_v2  ;;  %v8212_v33 = vand.u32 4294901760, %v3993_v10 }
 0x1ec   :  { %6189 = vmatpush3.msra.mxu0 %v7989_v34  ;;  %6208 = vmatpush3.msra.mxu1 %v7873_v25  ;;  %v8132_v25 = vsub.f32 %v4000_v7, %v8110_v6  ;;  %v8148_v52 = vsub.f32 %v3999_v14, %v8124_v44  ;;  %v8205_v34 = vand.u32 4294901760, %v8177_v59 }
 0x1ed   :  { %6190 = vmatprep.subr.mxu0 %v8005_v9  ;;  %6209 = vmatprep.subr.mxu1 %v7887_v43  ;;  %v8189_v58 = vand.u32 4294901760, %v8162_v49  ;;  %v8242_v13 = vsub.f32 %v3993_v10, %v8212_v33 }
 0x1ee   :  { %6191 = vmatpush3.msra.mxu0 %v8005_v9  ;;  %6210 = vmatpush3.msra.mxu1 %v7887_v43  ;;  %v3996_v43 = vld [vmem:[#allocation6 + $0x268] sm:$0xff]  ;;  %v8155_v12 = vand.u32 4294901760, %v8132_v25  ;;  %v8174_v51 = vand.u32 4294901760, %v8148_v52  ;;  %v8221_v9 = vsub.f32 %v4004_v63, %v8194_v15  ;;  %v4153_v22 = vsub.f32 %v8177_v59, %v8205_v34 }
 0x1ef   :  { %6192 = vmatprep.subr.mxu0 %v8012_v29  ;;  %6211 = vmatprep.subr.mxu1 %v7899_v20  ;;  %v8159_v0 = vand.u32 4294901760, %v3996_v43  ;;  %v8261_v62 = vand.u32 4294901760, %v8242_v13  ;;  %v8284_v63 = vand.u32 4294901760, %v8264_v38 }
 0x1f0   :  { %6193 = vmatpush3.msra.mxu0 %v8012_v29  ;;  %6194 = vmatprep.mubr.f32.mxu0 %v7922_v3  ;;  %v4139_v23 = vsub.f32 %v8148_v52, %v8174_v51  ;;  %v4088_v48 = vand.u32 4294901760, %v8221_v9  ;;  %v4154_v7 = vand.u32 4294901760, %v4153_v22 }
 0x1f1   :  { %6212 = vmatpush3.msra.mxu1 %v7899_v20  ;;  %6195 = vmatmul.mubr.f32.vlgmr.msra.gmra.mxu0 %v7926_v60  ;;  %v3989_v20 = vld [vmem:[#allocation2 + $0xe] sm:$0xff]  ;;  %v8192_v39 = vsub.f32 %v3996_v43, %v8159_v0  ;;  %v4181_v37 = vsub.f32 %v8242_v13, %v8261_v62 }
 0x1f2   :  { %6213 = vmatprep.subr.mxu1 %v7914_v28  ;;  %6224 = vmatprep.subr.mxu0 %v8098_v16  ;;  %v4007_v41 = vsel %vm47_vm1, %v3989_v20, 0  ;;  %v4140_v29 = vand.u32 4294901760, %v4139_v23  ;;  %v4089_v46 = vsub.f32 %v8221_v9, %v4088_v48  ;;  %v4195_v23 = vsub.f32 %v8264_v38, %v8284_v63 }
 0x1f3   :  { %6214 = vmatpush3.msra.mxu1 %v7914_v28  ;;  %6225 = vmatpush3.msra.mxu0 %v8098_v16  ;;  %v8171_v28 = vand.u32 4294901760, %v3995_v36  ;;  %v8198_v19 = vand.u32 4294901760, %v4007_v41 }
 0x1f4   :  { %6215 = vmatprep.subr.mxu1 %v7940_v61  ;;  %6226 = vmatprep.subr.mxu0 %v8104_v5 }
 0x1f5   :  { %6216 = vmatpush3.msra.mxu1 %v7940_v61  ;;  %6227 = vmatpush3.msra.mxu0 %v8104_v5  ;;  %v4132_v61 = vsub.f32 %v8132_v25, %v8155_v12  ;;  %v8208_v55 = vsub.f32 %v3995_v36, %v8171_v28  ;;  %v8230_v56 = vsub.f32 %v4007_v41, %v8198_v19  ;;  %v4090_v41 = vand.u32 4294901760, %v4089_v46 }
 0x1f6   :  { %6217 = vmatprep.subr.mxu1 %v7955_v4  ;;  %6228 = vmatprep.subr.mxu0 %v8110_v6 }
 0x1f7   :  { %6218 = vmatpush3.msra.mxu1 %v7955_v4  ;;  %6229 = vmatpush3.msra.mxu0 %v8110_v6  ;;  %v4126_v4 = vand.u32 4294901760, %v4125_v35  ;;  %v4133_v40 = vand.u32 4294901760, %v4132_v61  ;;  %v8236_v8 = vand.u32 4294901760, %v8208_v55  ;;  %v4098_v42 = vand.u32 4294901760, %v8230_v56 }
 0x1f8   :  { %6219 = vmatprep.subr.mxu1 %v7967_v57  ;;  %6230 = vmatprep.subr.mxu0 %v8124_v44 }
 0x1f9   :  { %6220 = vmatpush3.msra.mxu1 %v7967_v57  ;;  %6221 = vmatprep.mubr.f32.mxu1 %v7922_v3  ;;  %v4146_v3 = vsub.f32 %v8162_v49, %v8189_v58  ;;  %v8218_v57 = vand.u32 4294901760, %v8192_v39  ;;  %v4167_v14 = vsub.f32 %v8208_v55, %v8236_v8  ;;  %v4099_v36 = vsub.f32 %v8230_v56, %v4098_v42 }
 0x1fa   :  { %6231 = vmatpush3.msra.mxu0 %v8124_v44  ;;  %6222 = vmatmul.mubr.f32.vlgmr.msra.gmra.mxu1 %v7926_v60  ;;  %v8227_v60 = vand.u32 4294901760, %v3992_v32 }
 0x1fb   :  { %6232 = vmatprep.subr.mxu0 %v8136_v2  ;;  %6251 = vmatprep.subr.mxu1 %v4119_v18  ;;  %v4147_v26 = vand.u32 4294901760, %v4146_v3  ;;  %v4160_v1 = vsub.f32 %v8192_v39, %v8218_v57  ;;  %v4168_v35 = vand.u32 4294901760, %v4167_v14  ;;  %v4100_v61 = vand.u32 4294901760, %v4099_v36 }
 0x1fc   :  { %6233 = vmatpush3.msra.mxu0 %v8136_v2  ;;  %6252 = vmatpush3.msra.mxu1 %v4119_v18  ;;  %v8254_v21 = vsub.f32 %v3992_v32, %v8227_v60  ;;  %v4175_v18 = vand.u32 4294901760, %v4174_v27 }
 0x1fd   :  { %6234 = vmatprep.subr.mxu0 %v8145_v54  ;;  %6253 = vmatprep.subr.mxu1 %v4126_v4  ;;  %v4161_v43 = vand.u32 4294901760, %v4160_v1 }
 0x1fe   :  { %6235 = vmatpush3.msra.mxu0 %v8145_v54  ;;  %6254 = vmatpush3.msra.mxu1 %v4126_v4  ;;  %v8277_v20 = vand.u32 4294901760, %v8254_v21  ;;  %v4182_v4 = vand.u32 4294901760, %v4181_v37 }
 0x1ff   :  { %6236 = vmatprep.subr.mxu0 %v8159_v0  ;;  %6255 = vmatprep.subr.mxu1 %v4133_v40 }
 0x200   :  { %6237 = vmatpush3.msra.mxu0 %v8159_v0  ;;  %6256 = vmatpush3.msra.mxu1 %v4133_v40  ;;  %v4188_v10 = vsub.f32 %v8254_v21, %v8277_v20  ;;  %v4196_v40 = vand.u32 4294901760, %v4195_v23 }
 0x201   :  { %6238 = vmatprep.subr.mxu0 %v8171_v28  ;;  %6257 = vmatprep.subr.mxu1 %v4140_v29 }
 0x202   :  { %6239 = vmatpush3.msra.mxu0 %v8171_v28  ;;  %6258 = vmatpush3.msra.mxu1 %v4140_v29  ;;  %v4189_v32 = vand.u32 4294901760, %v4188_v10 }
 0x203   :  { %6240 = vmatprep.subr.mxu0 %v8186_v17  ;;  %6259 = vmatprep.subr.mxu1 %v4147_v26 }
 0x204   :  { %6241 = vmatpush3.msra.mxu0 %v8186_v17  ;;  %6260 = vmatpush3.msra.mxu1 %v4147_v26 }
 0x205   :  { %6242 = vmatprep.subr.mxu0 %v8212_v33  ;;  %6261 = vmatprep.subr.mxu1 %v4154_v7 }
 0x206   :  { %6243 = vmatpush3.msra.mxu0 %v8212_v33  ;;  %6262 = vmatpush3.msra.mxu1 %v4154_v7 }
 0x207   :  { %6244 = vmatprep.subr.mxu0 %v8227_v60  ;;  %6263 = vmatprep.subr.mxu1 %v4161_v43 }
 0x208   :  { %6245 = vmatpush3.msra.mxu0 %v8227_v60  ;;  %6264 = vmatpush3.msra.mxu1 %v4161_v43 }
 0x209   :  { %6246 = vmatprep.subr.mxu0 %v8239_v30  ;;  %6265 = vmatprep.subr.mxu1 %v4168_v35 }
 0x20a   :  { %6247 = vmatpush3.msra.mxu0 %v8239_v30  ;;  %6266 = vmatpush3.msra.mxu1 %v4168_v35 }
 0x20b   :  { %6248 = vmatprep.mubr.f32.mxu0 %v4090_v41  ;;  %6267 = vmatprep.subr.mxu1 %v4175_v18 }
 0x20c   :  { %6278 = vmatprep.subr.mxu0 %v8113_v45  ;;  %6249 = vmatmul.mubr.f32.vlgmr.msra.gmra.mxu0 %v4100_v61 }
 0x20d   :  { %6268 = vmatpush3.msra.mxu1 %v4175_v18  ;;  %6279 = vmatpush3.msra.mxu0 %v8113_v45 }
 0x20e   :  { %6269 = vmatprep.subr.mxu1 %v4182_v4  ;;  %6280 = vmatprep.subr.mxu0 %v8120_v11 }
 0x20f   :  { %6270 = vmatpush3.msra.mxu1 %v4182_v4  ;;  %6281 = vmatpush3.msra.mxu0 %v8120_v11 }
 0x210   :  { %6271 = vmatprep.subr.mxu1 %v4189_v32  ;;  %6282 = vmatprep.subr.mxu0 %v8132_v25 }
 0x211   :  { %6272 = vmatpush3.msra.mxu1 %v4189_v32  ;;  %6283 = vmatpush3.msra.mxu0 %v8132_v25 }
 0x212   :  { %6273 = vmatprep.subr.mxu1 %v4196_v40  ;;  %6284 = vmatprep.subr.mxu0 %v8148_v52 }
 0x213   :  { %6274 = vmatpush3.msra.mxu1 %v4196_v40  ;;  %6275 = vmatprep.mubr.f32.mxu1 %v8194_v15 }
 0x214   :  { %6285 = vmatpush3.msra.mxu0 %v8148_v52  ;;  %6276 = vmatmul.mubr.f32.vlgmr.msra.gmra.mxu1 %v8198_v19 }
 0x215   :  { %6286 = vmatprep.subr.mxu0 %v8162_v49  ;;  %6305 = vmatprep.subr.mxu1 %v8098_v16 }
 0x216   :  { %6287 = vmatpush3.msra.mxu0 %v8162_v49  ;;  %6306 = vmatpush3.msra.mxu1 %v8098_v16 }
 0x217   :  { %6288 = vmatprep.subr.mxu0 %v8177_v59  ;;  %6307 = vmatprep.subr.mxu1 %v8104_v5 }
 0x218   :  { %6289 = vmatpush3.msra.mxu0 %v8177_v59  ;;  %6308 = vmatpush3.msra.mxu1 %v8104_v5 }
 0x219   :  { %6290 = vmatprep.subr.mxu0 %v8192_v39  ;;  %6309 = vmatprep.subr.mxu1 %v8110_v6 }
 0x21a   :  { %6291 = vmatpush3.msra.mxu0 %v8192_v39  ;;  %6310 = vmatpush3.msra.mxu1 %v8110_v6 }
 0x21b   :  { %6292 = vmatprep.subr.mxu0 %v8208_v55  ;;  %6311 = vmatprep.subr.mxu1 %v8124_v44 }
 0x21c   :  { %6293 = vmatpush3.msra.mxu0 %v8208_v55  ;;  %6312 = vmatpush3.msra.mxu1 %v8124_v44 }
 0x21d   :  { %6294 = vmatprep.subr.mxu0 %v8224_v53  ;;  %6313 = vmatprep.subr.mxu1 %v8136_v2 }
 0x21e   :  { %6295 = vmatpush3.msra.mxu0 %v8224_v53  ;;  %6314 = vmatpush3.msra.mxu1 %v8136_v2 }
 0x21f   :  { %6296 = vmatprep.subr.mxu0 %v8242_v13  ;;  %6315 = vmatprep.subr.mxu1 %v8145_v54 }
 0x220   :  { %6297 = vmatpush3.msra.mxu0 %v8242_v13  ;;  %6316 = vmatpush3.msra.mxu1 %v8145_v54 }
 0x221   :  { %6298 = vmatprep.subr.mxu0 %v8254_v21  ;;  %6317 = vmatprep.subr.mxu1 %v8159_v0 }
 0x222   :  { %6299 = vmatpush3.msra.mxu0 %v8254_v21  ;;  %6318 = vmatpush3.msra.mxu1 %v8159_v0 }
 0x223   :  { %6300 = vmatprep.subr.mxu0 %v8264_v38  ;;  %6319 = vmatprep.subr.mxu1 %v8171_v28 }
 0x224   :  { %6301 = vmatpush3.msra.mxu0 %v8264_v38  ;;  %6302 = vmatprep.mubr.f32.mxu0 %v8221_v9 }
 0x225   :  { %6320 = vmatpush3.msra.mxu1 %v8171_v28  ;;  %6303 = vmatmul.mubr.f32.vlgmr.msra.gmra.mxu0 %v8230_v56 }
 0x226   :  { %6321 = vmatprep.subr.mxu1 %v8186_v17  ;;  %6332 = vmatprep.subr.mxu0 %v8129_v24 }
 0x227   :  { %6322 = vmatpush3.msra.mxu1 %v8186_v17  ;;  %6333 = vmatpush3.msra.mxu0 %v8129_v24 }
 0x228   :  { %6323 = vmatprep.subr.mxu1 %v8212_v33  ;;  %6334 = vmatprep.subr.mxu0 %v8141_v50 }
 0x229   :  { %6324 = vmatpush3.msra.mxu1 %v8212_v33  ;;  %6335 = vmatpush3.msra.mxu0 %v8141_v50 }
 0x22a   :  { %6325 = vmatprep.subr.mxu1 %v8227_v60  ;;  %6336 = vmatprep.subr.mxu0 %v8155_v12 }
 0x22b   :  { %6326 = vmatpush3.msra.mxu1 %v8227_v60  ;;  %6337 = vmatpush3.msra.mxu0 %v8155_v12 }
 0x22c   :  { %6327 = vmatprep.subr.mxu1 %v8239_v30  ;;  %6338 = vmatprep.subr.mxu0 %v8174_v51 }
 0x22d   :  { %6328 = vmatpush3.msra.mxu1 %v8239_v30  ;;  %6329 = vmatprep.mubr.f32.mxu1 %v4088_v48 }
 0x22e   :  { %6339 = vmatpush3.msra.mxu0 %v8174_v51  ;;  %6330 = vmatmul.mubr.f32.vlgmr.msra.gmra.mxu1 %v4098_v42 }
 0x22f   :  { %6340 = vmatprep.subr.mxu0 %v8189_v58  ;;  %6359 = vmatprep.subr.mxu1 %v8098_v16 }
 0x230   :  { %6341 = vmatpush3.msra.mxu0 %v8189_v58  ;;  %6360 = vmatpush3.msra.mxu1 %v8098_v16  ;;  %v8402_v16 = vpop.f32.mrf.mxu0 }
 0x231   :  { %6342 = vmatprep.subr.mxu0 %v8205_v34  ;;  %6361 = vmatprep.subr.mxu1 %v8104_v5 }
 0x232   :  { %6343 = vmatpush3.msra.mxu0 %v8205_v34  ;;  %6362 = vmatpush3.msra.mxu1 %v8104_v5  ;;  %v8404_v5 = vpop.f32.mrf.mxu0 }
 0x233   :  { %6344 = vmatprep.subr.mxu0 %v8218_v57  ;;  %6363 = vmatprep.subr.mxu1 %v8110_v6 }
 0x234   :  { %6345 = vmatpush3.msra.mxu0 %v8218_v57  ;;  %6364 = vmatpush3.msra.mxu1 %v8110_v6  ;;  %v5305_v6 = vpop.f32.mrf.mxu1  ;;  %v8406_v45 = vpop.f32.mrf.mxu0 }
 0x235   :  { %6346 = vmatprep.subr.mxu0 %v8236_v8  ;;  %6365 = vmatprep.subr.mxu1 %v8124_v44 }
 0x236   :  { %6347 = vmatpush3.msra.mxu0 %v8236_v8  ;;  %6366 = vmatpush3.msra.mxu1 %v8124_v44  ;;  %v303_v11 = vpop.f32.mrf.mxu1  ;;  %v8408_v44 = vpop.f32.mrf.mxu0 }
 0x237   :  { %6348 = vmatprep.subr.mxu0 %v8249_v31  ;;  %6367 = vmatprep.subr.mxu1 %v8136_v2 }
 0x238   :  { %6349 = vmatpush3.msra.mxu0 %v8249_v31  ;;  %6368 = vmatpush3.msra.mxu1 %v8136_v2  ;;  %v8410_v24 = vpop.f32.mrf.mxu1  ;;  %v8412_v25 = vpop.f32.mrf.mxu0 }
 0x239   :  { %6350 = vmatprep.subr.mxu0 %v8261_v62  ;;  %6369 = vmatprep.subr.mxu1 %v8145_v54 }
 0x23a   :  { %6351 = vmatpush3.msra.mxu0 %v8261_v62  ;;  %6370 = vmatpush3.msra.mxu1 %v8145_v54  ;;  %v8414_v2 = vpop.f32.mrf.mxu1  ;;  %v8416_v50 = vpop.f32.mrf.mxu0 }
 0x23b   :  { %6352 = vmatprep.subr.mxu0 %v8277_v20  ;;  %6371 = vmatprep.subr.mxu1 %v8159_v0 }
 0x23c   :  { %6353 = vmatpush3.msra.mxu0 %v8277_v20  ;;  %6372 = vmatpush3.msra.mxu1 %v8159_v0  ;;  %v8418_v54 = vpop.f32.mrf.mxu1  ;;  %v8420_v52 = vpop.f32.mrf.mxu0 }
 0x23d   :  { %6354 = vmatprep.subr.mxu0 %v8284_v63  ;;  %6373 = vmatprep.subr.mxu1 %v8171_v28 }
 0x23e   :  { %6355 = vmatpush3.msra.mxu0 %v8284_v63  ;;  %6356 = vmatprep.mubr.f32.mxu0 %v8194_v15  ;;  %v8422_v12 = vpop.f32.mrf.mxu1  ;;  %v8424_v0 = vpop.f32.mrf.mxu0 }
 0x23f   :  { %6374 = vmatpush3.msra.mxu1 %v8171_v28  ;;  %6357 = vmatmul.mubr.f32.vlgmr.msra.gmra.mxu0 %v8198_v19 }
 0x240   :  { %6375 = vmatprep.subr.mxu1 %v8186_v17  ;;  %6383 = vmatprep.mubr.f32.mxu1 %v8194_v15  ;;  %v5467_v49 = vpop.f32.mrf.mxu1  ;;  %v8426_v28 = vpop.f32.mrf.mxu0 }
 0x241   :  { %6376 = vmatpush3.msra.mxu1 %v8186_v17 }
 0x242   :  { %6377 = vmatprep.subr.mxu1 %v8212_v33  ;;  %v8428_v51 = vpop.f32.mrf.mxu1  ;;  %v8430_v59 = vpop.f32.mrf.mxu0 }
 0x243   :  { %6378 = vmatpush3.msra.mxu1 %v8212_v33 }
 0x244   :  { %6379 = vmatprep.subr.mxu1 %v8227_v60  ;;  %v8432_v17 = vpop.f32.mrf.mxu1  ;;  %v8434_v58 = vpop.f32.mrf.mxu0 }
 0x245   :  { %6380 = vmatpush3.msra.mxu1 %v8227_v60 }
 0x246   :  { %6381 = vmatprep.subr.mxu1 %v8239_v30  ;;  %v8436_v39 = vpop.f32.mrf.mxu1  ;;  %v8438_v15 = vpop.f32.mrf.mxu0 }
 0x247   :  { %6382 = vmatpush3.msra.mxu1 %v8239_v30 }
 0x248   :  { %6384 = vmatmul.mubr.f32.vlgmr.msra.gmra.mxu1 %v8198_v19  ;;  %v8440_v19 = vpop.f32.mrf.mxu1  ;;  %v5602_v34 = vpop.f32.mrf.mxu0 }
 0x24a   :  { %v8442_v55 = vpop.f32.mrf.mxu1  ;;  %v8444_v33 = vpop.f32.mrf.mxu0 }
 0x24c   :  { %v5629_v3 = vpop.f32.mrf.mxu1  ;;  %v8446_v57 = vpop.f32.mrf.mxu0 }
 0x24e   :  { %v1613_v47 = vpop.f32.mrf.mxu1  ;;  %v8448_v9 = vpop.f32.mrf.mxu0 }
 0x250   :  { %v8450_v53 = vpop.f32.mrf.mxu1  ;;  %v8452_v60 = vpop.f32.mrf.mxu0 }
 0x252   :  { %v8454_v56 = vpop.f32.mrf.mxu1  ;;  %v8456_v29 = vpop.f32.mrf.mxu0 }
 0x254   :  { %v8458_v22 = vpop.f32.mrf.mxu1  ;;  %v5764_v8 = vpop.f32.mrf.mxu0 }
 0x256   :  { %v8460_v30 = vpop.f32.mrf.mxu1  ;;  %v2127_v13 = vpop.f32.mrf.mxu0 }
 0x257   :  { %8573 = vst [vmem:[#allocation12_spill] sm:$0xff] %v8460_v30 }
 0x258   :  { %v5791_v26 = vpop.f32.mrf.mxu1  ;;  %v5818_v1 = vpop.f32.mrf.mxu0 }
 0x25a   :  { %v2268_v48 = vpop.f32.mrf.mxu1  ;;  %v8462_v31 = vpop.f32.mrf.mxu0 }
 0x25c   :  { %v8464_v42 = vpop.f32.mrf.mxu1  ;;  %v8466_v21 = vpop.f32.mrf.mxu0 }
 0x25e   :  { %v8468_v7 = vpop.f32.mrf.mxu1  ;;  %v8470_v14 = vpop.f32.mrf.mxu0 }
 0x25f   :  { %8574 = vst [vmem:[#allocation13_spill] sm:$0xff] %v8470_v14  ;;  %v304_v14 = vadd.f32 %v303_v11, %v8404_v5  ;;  %v965_v5 = vadd.f32 %v5467_v49, %v8420_v52 }
 0x260   :  { %v8472_v62 = vpop.f32.mrf.mxu1  ;;  %v5926_v38 = vpop.f32.mrf.mxu0 }
 0x261   :  { %8575 = vst [vmem:[#allocation14_spill] sm:$0xff] %v8472_v62 }
 0x262   :  { %v8474_v43 = vpop.f32.mrf.mxu1  ;;  %v2782_v46 = vpop.f32.mrf.mxu0 }
 0x263   :  { %8576 = vst [vmem:[#allocation15_spill] sm:$0xff] %v8474_v43  ;;  %v310_v43 = vadd.f32 %v5305_v6, %v8402_v16 }
 0x264   :  { %v5953_v27 = vpop.f32.mrf.mxu1  ;;  %v5980_v36 = vpop.f32.mrf.mxu0 }
 0x266   :  { %v2923_v20 = vpop.f32.mrf.mxu1  ;;  %v8476_v35 = vpop.f32.mrf.mxu0 }
 0x268   :  { %v8478_v37 = vpop.f32.mrf.mxu1  ;;  %v8480_v63 = vpop.f32.mrf.mxu0 }
 0x269   :  { %8577 = vst [vmem:[#allocation16_spill] sm:$0xff] %v8478_v37  ;;  %8578 = vst [vmem:[#allocation17_spill] sm:$0xff] %v8480_v63  ;;  %v413_v63 = vadd.f32 %v8406_v45, %v310_v43 }
 0x26a   :  { %v8482_v41 = vpop.f32.mrf.mxu1  ;;  %v8484_v18 = vpop.f32.mrf.mxu0 }
 0x26b   :  { %8579 = vst [vmem:[#allocation18_spill] sm:$0xff] %v8482_v41  ;;  %8580 = vst [vmem:[#allocation19_spill] sm:$0xff] %v8484_v18  ;;  %v506_v18 = vadd.f32 %v8410_v24, %v413_v63  ;;  %v959_v24 = vadd.f32 %v8428_v51, %v8424_v0 }
 0x26c   :  { %v8486_v61 = vpop.f32.mrf.mxu1 }
 0x26d   :  { %8581 = vst [vmem:[#allocation20_spill] sm:$0xff] %v8486_v61  ;;  %v406_v61 = vadd.f32 %v8408_v44, %v304_v14  ;;  %v619_v37 = vadd.f32 %v8412_v25, %v506_v18  ;;  %v4663_v44 = vld [vmem:[%s8571_s2] ss:$0 sm:$0xff]  ;;  %v1068_v25 = vadd.f32 %v8426_v28, %v965_v5  ;;  %v1614_v14 = vadd.f32 %v1613_v47, %v8444_v33  ;;  %s6463_s2 = smov [#allocation8]  }
 0x26e   :  { %v8488_v4 = vpop.f32.mrf.mxu1  ;;  %v2275_v18 = vadd.f32 %v5791_v26, %v5764_v8  ;;  %v2924_v26 = vadd.f32 %v2923_v20, %v2782_v46  ;;  %v8585_v46 = vld [vmem:[#allocation12_spill] sm:$0xff]  ;;  %s4650_s24 = sshll.u32 %s6463_s2, 4  ;;  %s4651_s24 = int_to_ptr.vmem [resolvable:$true] %s4650_s24 }
 0x26f   :  { %8582 = vst [vmem:[#allocation21_spill] sm:$0xff] %v8488_v4  ;;  %v708_v45 = vadd.f32 %v8418_v54, %v619_v37  ;;  %v1161_v54 = vadd.f32 %v8432_v17, %v1068_v25  ;;  %v1716_v51 = vadd.f32 %v8448_v9, %v1614_v14  ;;  %v2930_v17 = vadd.f32 %v5953_v27, %v5926_v38  ;;  %v8591_v14 = vld [vmem:[#allocation15_spill] sm:$0xff]  ;;  %s6432_s25 = scalar_lea.vmem %s4651_s24, 256  ;;  %p6437_p11 = scmp.lt.s32.totalorder %s4651_s24, %s4651_s24 }
 0x270   :  { %v8584_v38 = vld [vmem:[#allocation16_spill] sm:$0xff]  ;;  %p6433_p10 = scmp.ne.s32.totalorder %s4651_s24, %s6432_s25  ;;  %p6438_p12 = scmp.lt.s32.totalorder %s6432_s25, %s6432_s25 }
 0x271   :  { %v712_v63 = vadd.f32 %v4663_v44, %v708_v45  ;;  %v1274_v28 = vadd.f32 %v8434_v58, %v1161_v54  ;;  %v1808_v8 = vadd.f32 %v8454_v56, %v1716_v51  ;;  %v8587_v45 = vld [vmem:[#allocation13_spill] sm:$0xff] }
 0x272   :  { %p6439_p13 = por %p6438_p12, %p6437_p11 }
 0x273   :  { %v1363_v47 = vadd.f32 %v8440_v19, %v1274_v28 }
 0x274   :  { %p6440_p0 = pnand %p6439_p13, %p6433_p10 }
 0x27e   :  { %v6088_v10 = vpop.f32.mrf.mxu0 }
 0x280   :  { %v8490_v23 = vpop.f32.mrf.mxu0 }
 0x281   :  { %8583 = vst [vmem:[#allocation22_spill] sm:$0xff] %v8490_v23  ;;  %v498_v23 = vadd.f32 %v8414_v2, %v406_v61  ;;  %v1620_v2 = vadd.f32 %v5629_v3, %v5602_v34  ;;  %v2378_v3 = vadd.f32 %v5818_v1, %v2275_v18  ;;  %v1923_v1 = vadd.f32 %v8456_v29, %v1808_v8 }
 0x283   :  { %v613_v6 = vadd.f32 %v8416_v50, %v498_v23  ;;  %v1061_v50 = vadd.f32 %v8430_v59, %v959_v24  ;;  %v1723_v37 = vadd.f32 %v8446_v57, %v1620_v2  ;;  %v2269_v59 = vadd.f32 %v2268_v48, %v2127_v13 }
 0x284   :  { %v2471_v9 = vadd.f32 %v8464_v42, %v2378_v3  ;;  %v1367_v42 = vadd.f32 %v1363_v47, %v712_v63  ;;  %v8593_v63 = vld [vmem:[#allocation20_spill] sm:$0xff] }
 0x285   :  { %v702_v52 = vadd.f32 %v8422_v12, %v613_v6  ;;  %v1153_v0 = vadd.f32 %v8436_v39, %v1061_v50  ;;  %v1816_v12 = vadd.f32 %v8450_v53, %v1723_v37  ;;  %v2371_v58 = vadd.f32 %v8462_v31, %v2269_v59 }
 0x286   :  { %v6115_v32 = vpop.f32.mrf.mxu1  ;;  %v3033_v53 = vadd.f32 %v5980_v36, %v2930_v17  ;;  %v2584_v56 = vadd.f32 %v8466_v21, %v2471_v9  ;;  %v2012_v36 = vadd.f32 %v8585_v46, %v1923_v1 }
 0x287   :  { %v711_v34 = vadd.f32 %v4663_v44, %v702_v52  ;;  %v1268_v57 = vadd.f32 %v8438_v15, %v1153_v0  ;;  %v1929_v39 = vadd.f32 %v8452_v60, %v1816_v12  ;;  %v3585_v15 = vadd.f32 %v6115_v32, %v6088_v10  ;;  %v8588_v44 = vld [vmem:[#allocation14_spill] sm:$0xff] }
 0x288   :  { %v3578_v62 = vpop.f32.mrf.mxu1  ;;  %v2463_v19 = vadd.f32 %v8468_v7, %v2371_v58  ;;  %v3026_v60 = vadd.f32 %v8476_v35, %v2924_v26  ;;  %v3126_v31 = vadd.f32 %v8584_v38, %v3033_v53  ;;  %v8586_v20 = vld [vmem:[#allocation22_spill] sm:$0xff]  ;;  %v8590_v7 = vld [vmem:[#allocation17_spill] sm:$0xff] }
 0x289   :  { %v1357_v13 = vadd.f32 %v8442_v55, %v1268_v57  ;;  %v2018_v48 = vadd.f32 %v8458_v22, %v1929_v39  ;;  %v3579_v6 = vadd.f32 %v3578_v62, %v8586_v20  ;;  %v2673_v22 = vadd.f32 %v8588_v44, %v2584_v56  ;;  %v8589_v10 = vld [vmem:[#allocation18_spill] sm:$0xff] }
 0x28a   :  { %v2578_v29 = vadd.f32 %v8587_v45, %v2463_v19  ;;  %v3118_v32 = vadd.f32 %v8589_v10, %v3026_v60  ;;  %v3239_v24 = vadd.f32 %v8590_v7, %v3126_v31 }
 0x28b   :  { %v1366_v35 = vadd.f32 %v1357_v13, %v711_v34  ;;  %v2022_v54 = vadd.f32 %v2018_v48, %v1367_v42 }
 0x28c   :  { %v2667_v62 = vadd.f32 %v8591_v14, %v2578_v29  ;;  %v3328_v18 = vadd.f32 %v8593_v63, %v3239_v24 }
 0x28d   :  { %v2021_v34 = vadd.f32 %v2012_v36, %v1366_v35  ;;  %v2677_v3 = vadd.f32 %v2673_v22, %v2022_v54 }
 0x28f   :  { %v2676_v8 = vadd.f32 %v2667_v62, %v2021_v34  ;;  %v3332_v58 = vadd.f32 %v3328_v18, %v2677_v3 }
 0x297   :  { %v6142_v40 = vpop.f32.mrf.mxu0 }
 0x298   :  { %v3688_v55 = vadd.f32 %v6142_v40, %v3585_v15  ;;  %v8592_v40 = vld [vmem:[#allocation19_spill] sm:$0xff] }
 0x299   :  { %v8495_v30 = vpop.f32.mrf.mxu0  ;;  %v3233_v37 = vadd.f32 %v8592_v40, %v3118_v32 }
 0x29a   :  { %v3681_v2 = vadd.f32 %v8495_v30, %v3579_v6  ;;  %v8594_v30 = vld [vmem:[#allocation21_spill] sm:$0xff] }
 0x29b   :  { %v3322_v17 = vadd.f32 %v8594_v30, %v3233_v37 }
 0x29d   :  { %v3331_v26 = vadd.f32 %v3322_v17, %v2676_v8 }
 0x2a0   :  { %v8497_v41 = vpop.f32.mrf.mxu1 }
 0x2a1   :  { %v3781_v52 = vadd.f32 %v8497_v41, %v3688_v55 }
 0x2a2   :  { %v8505_v16 = vpop.f32.mrf.mxu1 }
 0x2a3   :  { %v3773_v28 = vadd.f32 %v8505_v16, %v3681_v2 }
 0x2b1   :  { %v8501_v4 = vpop.f32.mrf.mxu0 }
 0x2b2   :  { %v3894_v51 = vadd.f32 %v8501_v4, %v3781_v52 }
 0x2b3   :  { %v8510_v11 = vpop.f32.mrf.mxu0 }
 0x2ba   :  { %v8512_v43 = vpop.f32.mrf.mxu1 }
 0x2bc   :  { %v8525_v61 = vpop.f32.mrf.mxu1 }
 0x2cc   :  { %v6250_v49 = vpop.f32.mrf.mxu0 }
 0x2ce   :  { %v4092_v23 = vpop.f32.mrf.mxu0 }
 0x2d4   :  { %v6277_v33 = vpop.f32.mrf.mxu1 }
 0x2d5   :  { %v4240_v50 = vadd.f32 %v6277_v33, %v6250_v49  ;;  %v3888_v49 = vadd.f32 %v8510_v11, %v3773_v28  ;;  %v3983_v33 = vadd.f32 %v8512_v43, %v3894_v51 }
 0x2d6   :  { %v4233_v27 = vpop.f32.mrf.mxu1 }
 0x2d7   :  { %v4234_v12 = vadd.f32 %v4233_v27, %v4092_v23  ;;  %v3977_v16 = vadd.f32 %v8525_v61, %v3888_v49  ;;  %v3987_v53 = vadd.f32 %v3983_v33, %v3332_v58 }
 0x2d9   :  { %v3986_v11 = vadd.f32 %v3977_v16, %v3331_v26 }
 0x2e5   :  { %v6304_v5 = vpop.f32.mrf.mxu0 }
 0x2e6   :  { %v4343_v59 = vadd.f32 %v6304_v5, %v4240_v50 }
 0x2e7   :  { %v4335_v21 = vpop.f32.mrf.mxu0 }
 0x2e8   :  { %v4336_v57 = vadd.f32 %v4335_v21, %v4234_v12 }
 0x2ee   :  { %v6331_v25 = vpop.f32.mrf.mxu1 }
 0x2ef   :  { %v4436_v47 = vadd.f32 %v6331_v25, %v4343_v59 }
 0x2f0   :  { %v4427_v41 = vpop.f32.mrf.mxu1 }
 0x2f1   :  { %v4428_v9 = vadd.f32 %v4427_v41, %v4336_v57 }
 0x2ff   :  { %v6358_v0 = vpop.f32.mrf.mxu0 }
 0x300   :  { %v4549_v4 = vadd.f32 %v6358_v0, %v4436_v47 }
 0x301   :  { %v4542_v39 = vpop.f32.mrf.mxu0 }
 0x302   :  { %v4543_v5 = vadd.f32 %v4542_v39, %v4428_v9 }
 0x308   :  { %v6385_v23 = vpop.f32.mrf.mxu1 }
 0x309   :  { %v4638_v13 = vadd.f32 %v6385_v23, %v4549_v4 }
 0x30a   :  { %v4631_v1 = vpop.f32.mrf.mxu1 }
 0x30b   :  { %v4642_v48 = vadd.f32 %v4638_v13, %v3987_v53  ;;  %v4632_v43 = vadd.f32 %v4631_v1, %v4543_v5 }
 0x30d   :  { %4644 = vst.msk [vmem:[#allocation8 + $0x8] sm:$0xff] %vm47_vm1, %v4642_v48  ;;  %v4641_v15 = vadd.f32 %v4632_v43, %v3986_v11 }
 0x30f   :  { %4643 = vst.msk [vmem:[#allocation8] sm:$0xff] %vm47_vm1, %v4641_v15 }
 0x310   :  { %6443 = shalt.err (!%p6440_p0)
}
 0x311   :  { %4656 = dma.vmem_to_hbm [thread:$0]  %s4651_s24, 256, %s8572_s3, [#allocation5], %s6459_s15, %s6459_s15, %s6460_s16  }
 0x312   :  { %6456 = dma.done.wait [#allocation5], 256  }
 0x313   :  { %6457 = vsyncadd [#allocation5], 4294967040 }
 0x314   :  { %4660 = vsyncpa [#allocation4], 1 }
 0x315   :  { %4661 = vsyncpa [#allocation7], 1 }
 0x316   :  { %4662 = vsyncpa [#allocation5], 1 }

</bundles_post_ra>
